<compile_context>
chip_gen: v5e
topology: v5e:2x2
jax: 0.10.0
libtpu: 0.0.40
codegen_flags: <defaults>
</compile_context>

<pallas_src>
import jax
import jax.numpy as jnp
from jax.experimental import pallas as pl
from jax.experimental.pallas import tpu as pltpu

_LANE = 128
_VMEM_TILE_BUDGET = 20 * 1024 * 1024   # bytes used for tile sizing (headroom)
_VMEM_LIMIT_BYTES = 32 * 1024 * 1024   # explicit scoped-VMEM limit (safe on all gens)


def _fused_kernel(x1_ref, x2_ref, inp_ref, out_ref, acc_ref):
    """out = inp + (x1 @ x2) + inp, with the matmul hoisted out of the batch dim."""
    k = pl.program_id(2)

    # Zero the f32 accumulator at the start of each (i, j) tile's K loop.
    @pl.when(k == 0)
    def _():
        acc_ref[...] = jnp.zeros_like(acc_ref)

    # Batch-invariant matmul: computed once per (i, j, k), NOT per batch.
    acc_ref[...] += jnp.dot(
        x1_ref[...], x2_ref[...], preferred_element_type=jnp.float32
    )

    # Finalize: broadcast the (tm, tn) result over the batch dim and fuse the
    # two elementwise adds (out = inp + v1 + inp). Lane-dense 128k-wide store.
    @pl.when(k == pl.num_programs(2) - 1)
    def _():
        inp = inp_ref[...].astype(jnp.float32)
        out_ref[...] = (inp + acc_ref[...][None, :, :] + inp).astype(out_ref.dtype)


def _round_up(x, m):
    return (x + m - 1) // m * m


def _tile_candidates(dim):
    # `dim` is already a multiple of 128 here.  Prefer >=256 tiles (full
    # 256x256 MXU fill on v6e/v7x); 128 is the floor (native v5e MXU size).
    cands = [t for t in (512, 384, 256, 128) if t <= dim and dim % t == 0]
    return cands or [dim]


def _choose_tiles(M, K, N, B, itemsize=4, budget=_VMEM_TILE_BUDGET):
    cm, cn, ck = _tile_candidates(M), _tile_candidates(N), _tile_candidates(K)

    def footprint(tm, tn, tk):
        per_step = tm * tk + tk * tn + 2 * B * tm * tn      # x1 + x2 + inp + out
        return 2 * per_step * itemsize + tm * tn * 4        # double-buffered + f32 acc

    for tm in cm:
        for tn in cn:
            for tk in ck:
                if footprint(tm, tn, tk) <= budget:
                    return tm, tn, tk
    # TODO(synk): for huge B even (128,128,128) may exceed the budget; tile
    # the batch dim with an extra grid axis instead of shrinking M/N further.
    return cm[-1], cn[-1], ck[-1]


@jax.jit
def model_forward(x1, x2, inp):
    M, K = x1.shape
    K2, N = x2.shape
    B, Mi, Ni = inp.shape
    assert K == K2 and M == Mi and N == Ni

    # Pad every matmul/lane dim up to a multiple of 128 so ragged shapes stay
    # on the aligned-tile path (zero padding is exact for the matmul; padded
    # rows/cols are sliced off below).
    Mp, Kp, Np = (_round_up(d, _LANE) for d in (M, K, N))
    if (Mp, Kp, Np) != (M, K, N):
        x1 = jnp.pad(x1, ((0, Mp - M), (0, Kp - K)))
        x2 = jnp.pad(x2, ((0, Kp - K), (0, Np - N)))
        inp = jnp.pad(inp, ((0, 0), (0, Mp - M), (0, Np - N)))

    tm, tn, tk = _choose_tiles(Mp, Kp, Np, B, itemsize=inp.dtype.itemsize)
    grid = (Mp // tm, Np // tn, Kp // tk)

    cost = pl.CostEstimate(
        flops=2 * Mp * Np * Kp,
        transcendentals=0,
        bytes_accessed=4 * (Mp * Kp + Kp * Np + 2 * B * Mp * Np),
    )

    out = pl.pallas_call(
        _fused_kernel,
        out_shape=jax.ShapeDtypeStruct((B, Mp, Np), inp.dtype),
        grid_spec=pltpu.PrefetchScalarGridSpec(
            num_scalar_prefetch=0,
            grid=grid,
            in_specs=[
                pl.BlockSpec((tm, tk), lambda i, j, k: (i, k)),        # x1
                pl.BlockSpec((tk, tn), lambda i, j, k: (k, j)),        # x2
                pl.BlockSpec((B, tm, tn), lambda i, j, k: (0, i, j)),  # inp (resident over k)
            ],
            out_specs=pl.BlockSpec((B, tm, tn), lambda i, j, k: (0, i, j)),
            scratch_shapes=[pltpu.VMEM((tm, tn), jnp.float32)],
        ),
        compiler_params=pltpu.CompilerParams(
            dimension_semantics=("parallel", "parallel", "arbitrary"),
            vmem_limit_bytes=_VMEM_LIMIT_BYTES,
        ),
        cost_estimate=cost,
    )(x1, x2, inp)

    if (Mp, Np) != (M, N):
        out = out[:, :M, :N]
    return out


if __name__ == "__main__":
    key = jax.random.PRNGKey(0)
    k1, k2, k3 = jax.random.split(key, 3)

    # Tile-scale, lane-aligned demo shape: tiles become full-extent 256 blocks
    # -> one grid point, no per-step pipeline overhead.
    B, M, K, N = 2, 256, 256, 256
    x1 = jax.random.normal(k1, (M, K), dtype=jnp.float32)
    x2 = jax.random.normal(k2, (K, N), dtype=jnp.float32)
    inp = jax.random.normal(k3, (B, M, N), dtype=jnp.float32)

    out = model_forward(x1, x2, inp)
    jax.block_until_ready(out)

    ref = inp + (x1 @ x2)[None, :, :] + inp
    assert out.shape == (B, M, N)
    assert jnp.allclose(out, ref, rtol=2e-2, atol=1e-2)

    # Ragged / non-128-aligned shapes exercise the new pad-and-slice path
    # (mirrors the original module's tiny, unaligned example sizes).
    B2, M2, K2, N2 = 3, 40, 24, 56
    y1 = jax.random.normal(k1, (M2, K2), dtype=jnp.float32)
    y2 = jax.random.normal(k2, (K2, N2), dtype=jnp.float32)
    yin = jax.random.normal(k3, (B2, M2, N2), dtype=jnp.float32)

    out2 = model_forward(y1, y2, yin)
    jax.block_until_ready(out2)

    ref2 = yin + (y1 @ y2)[None, :, :] + yin
    assert out2.shape == (B2, M2, N2)
    assert jnp.allclose(out2, ref2, rtol=2e-2, atol=1e-2)

    print("KERNEL_OK")
</pallas_src>

<mosaic_0001>
module attributes {stable_mosaic.version = 11 : i64} {
  func.func @_fused_kernel(%arg0: i32, %arg1: i32, %arg2: i32, %arg3: memref<256x256xf32, #tpu.memory_space<vmem>>, %arg4: memref<256x256xf32, #tpu.memory_space<vmem>>, %arg5: memref<2x256x256xf32, #tpu.memory_space<vmem>>, %arg6: memref<2x256x256xf32, #tpu.memory_space<vmem>>, %arg7: memref<256x256xf32, #tpu.memory_space<vmem>>) attributes {dimension_semantics = [#tpu.dimension_semantics<parallel>, #tpu.dimension_semantics<parallel>, #tpu.dimension_semantics<arbitrary>], iteration_bounds = array<i64: 1, 1, 1>, scalar_prefetch = 0 : i64, scratch_operands = 1 : i64, tpu.core_type = #tpu.core_type<tc>, window_params = [{transform_indices = @transform_0, window_bounds = array<i64: 256, 256>}, {transform_indices = @transform_1, window_bounds = array<i64: 256, 256>}, {transform_indices = @transform_2, window_bounds = array<i64: 2, 256, 256>}, {transform_indices = @transform_3, window_bounds = array<i64: 2, 256, 256>}]} {
    %c0_i32 = arith.constant 0 : i32
    %0 = arith.cmpi eq, %arg2, %c0_i32 : i32
    %1 = arith.extui %0 : i1 to i32
    %c0_i32_0 = arith.constant 0 : i32
    %2 = arith.cmpi ne, %1, %c0_i32_0 : i32
    scf.if %2 {
      %cst_10 = arith.constant 0.000000e+00 : f32
      %12 = vector.broadcast %cst_10 : f32 to vector<256x256xf32>
      %c0_11 = arith.constant 0 : index
      %c0_12 = arith.constant 0 : index
      %13 = vector.load %arg7[%c0_11, %c0_12] : memref<256x256xf32, #tpu.memory_space<vmem>>, vector<256x256xf32>
      tpu.vector_store %arg7[%c0_11, %c0_12], %12 {strides = array<i32>} : memref<256x256xf32, #tpu.memory_space<vmem>>, vector<256x256xf32>,
    } else {
    }
    %c0 = arith.constant 0 : index
    %c0_1 = arith.constant 0 : index
    %3 = vector.load %arg7[%c0, %c0_1] : memref<256x256xf32, #tpu.memory_space<vmem>>, vector<256x256xf32>
    %c0_2 = arith.constant 0 : index
    %c0_3 = arith.constant 0 : index
    %4 = vector.load %arg3[%c0_2, %c0_3] : memref<256x256xf32, #tpu.memory_space<vmem>>, vector<256x256xf32>
    %c0_4 = arith.constant 0 : index
    %c0_5 = arith.constant 0 : index
    %5 = vector.load %arg4[%c0_4, %c0_5] : memref<256x256xf32, #tpu.memory_space<vmem>>, vector<256x256xf32>
    %cst = arith.constant dense<0.000000e+00> : vector<256x256xf32>
    %6 = tpu.matmul %4, %5, %cst {dimension_numbers = #tpu.dot_dimension_numbers<[1], [0], [0], [1], [0, 0, 1, 1], [], []>} : vector<256x256xf32>, vector<256x256xf32>, vector<256x256xf32> -> vector<256x256xf32>
    %7 = arith.addf %3, %6 : vector<256x256xf32>
    %c0_6 = arith.constant 0 : index
    %c0_7 = arith.constant 0 : index
    %8 = vector.load %arg7[%c0_6, %c0_7] : memref<256x256xf32, #tpu.memory_space<vmem>>, vector<256x256xf32>
    tpu.vector_store %arg7[%c0_6, %c0_7], %7 {strides = array<i32>} : memref<256x256xf32, #tpu.memory_space<vmem>>, vector<256x256xf32>,
    %c0_i32_8 = arith.constant 0 : i32
    %9 = arith.cmpi eq, %arg2, %c0_i32_8 : i32
    %10 = arith.extui %9 : i1 to i32
    %c0_i32_9 = arith.constant 0 : i32
    %11 = arith.cmpi ne, %10, %c0_i32_9 : i32
    scf.if %11 {
      %c0_10 = arith.constant 0 : index
      %c0_11 = arith.constant 0 : index
      %c0_12 = arith.constant 0 : index
      %12 = vector.load %arg5[%c0_10, %c0_11, %c0_12] : memref<2x256x256xf32, #tpu.memory_space<vmem>>, vector<2x256x256xf32>
      %c0_13 = arith.constant 0 : index
      %c0_14 = arith.constant 0 : index
      %13 = vector.load %arg7[%c0_13, %c0_14] : memref<256x256xf32, #tpu.memory_space<vmem>>, vector<256x256xf32>
      %14 = vector.shape_cast %13 : vector<256x256xf32> to vector<1x256x256xf32>
      %15 = vector.broadcast %14 : vector<1x256x256xf32> to vector<2x256x256xf32>
      %16 = arith.addf %12, %15 : vector<2x256x256xf32>
      %17 = arith.addf %16, %12 : vector<2x256x256xf32>
      %c0_15 = arith.constant 0 : index
      %c0_16 = arith.constant 0 : index
      %c0_17 = arith.constant 0 : index
      %18 = vector.load %arg6[%c0_15, %c0_16, %c0_17] : memref<2x256x256xf32, #tpu.memory_space<vmem>>, vector<2x256x256xf32>
      tpu.vector_store %arg6[%c0_15, %c0_16, %c0_17], %17 {strides = array<i32>} : memref<2x256x256xf32, #tpu.memory_space<vmem>>, vector<2x256x256xf32>,
    } else {
    }
    return
  }
  func.func @transform_0(%arg0: i32, %arg1: i32, %arg2: i32) -> (i32, i32) {
    %c0_i32 = arith.constant 0 : i32
    return %arg0, %arg2 : i32, i32
  }
  func.func @transform_1(%arg0: i32, %arg1: i32, %arg2: i32) -> (i32, i32) {
    %c0_i32 = arith.constant 0 : i32
    return %arg2, %arg1 : i32, i32
  }
  func.func @transform_2(%arg0: i32, %arg1: i32, %arg2: i32) -> (i32, i32, i32) {
    %c0_i32 = arith.constant 0 : i32
    %c0_i32_0 = arith.constant 0 : i32
    return %c0_i32, %arg0, %arg1 : i32, i32, i32
  }
  func.func @transform_3(%arg0: i32, %arg1: i32, %arg2: i32) -> (i32, i32, i32) {
    %c0_i32 = arith.constant 0 : i32
    %c0_i32_0 = arith.constant 0 : i32
    return %c0_i32, %arg0, %arg1 : i32, i32, i32
  }
}

</mosaic_0001>

<bundles_post_ra>
// kernel: model_forward.1
= control target key start
LH: loop header
LB: loop body
LE: loop exit
PB: predicated region body
PF: predicated region fallthrough
CT: control target
= control target key end

     0   :  { %8 = vsyncpa [#allocation4], 0  ;;  %s1659_s0 = inlined_call_operand.hbm [shape: f32[256,256], index: 0, kind: input, shape index: {}]   ;;  %s1660_s1 = inlined_call_operand.hbm [shape: f32[256,256], index: 1, kind: input, shape index: {}]   ;;  %s1661_s2 = inlined_call_operand.hbm [shape: f32[2,256,256], index: 2, kind: input, shape index: {}]   ;;  %s1662_s3 = inlined_call_operand.hbm [shape: f32[2,256,256], index: 3, kind: output, shape index: {}]  }
   0x1   :  { %9 = vsyncpa [#allocation7], 0 }
   0x2   :  { %10 = vsyncpa [#allocation5], 0  ;;  %s28_s14 = sshll.u32 %s1660_s1, 4  ;;  %s1609_s15 = smov [#allocation6]   ;;  %s29_s14 = int_to_ptr.hbm [resolvable:$true] %s28_s14 }
   0x3   :  { %s30_s16 = sshll.u32 %s1609_s15, 4  ;;  %s15_s19 = sshll.u32 %s1659_s0, 4  ;;  %s31_s16 = int_to_ptr.vmem [resolvable:$true] %s30_s16  ;;  %s16_s19 = int_to_ptr.hbm [resolvable:$true] %s15_s19 }
   0x4   :  { %s1610_s20 = smov 256   ;;  %s1611_s21 = smov 16  }
   0x5   :  { %36 = dma.hbm_to_vmem [thread:$0]  %s29_s14, 8192, %s31_s16, [#allocation7], %s1610_s20, %s1610_s20, %s1611_s21  }
   0x6   :  { %s1612_s22 = smov [#allocation3]   ;;  %s41_s1 = sshll.u32 %s1661_s2, 4  ;;  %s42_s1 = int_to_ptr.hbm [resolvable:$true] %s41_s1 }
   0x7   :  { %s17_s23 = sshll.u32 %s1612_s22, 4  ;;  %s1613_s0 = smov [#allocation8]   ;;  %s18_s23 = int_to_ptr.vmem [resolvable:$true] %s17_s23 }
   0x8   :  { %23 = dma.hbm_to_vmem [thread:$0]  %s16_s19, 8192, %s18_s23, [#allocation4], %s1610_s20, %s1610_s20, %s1611_s21  }
   0x9   :  { %s43_s26 = sshll.u32 %s1613_s0, 4  ;;  %s44_s26 = int_to_ptr.vmem [resolvable:$true] %s43_s26 }
   0xa   :  { %49 = dma.hbm_to_vmem [thread:$0]  %s42_s1, 16384, %s44_s26, [#allocation7], %s1610_s20, %s1610_s20, %s1611_s21  }
   0xb   :  { %1603 = dma.done.wait [#allocation4], 8192  }
   0xc   :  { %1604 = vsyncadd [#allocation4], 4294959104 }
   0xd   :  { %1605 = dma.done.wait [#allocation7], 24576  }
   0xe   :  { %1606 = vsyncadd [#allocation7], 4294942720  ;;  %v289_v0 = vld [vmem:[#allocation6 + $0xf8] sm:$0xff]  ;;  %v287_v2 = vld [vmem:[#allocation6 + $0xe8] sm:$0xff]  ;;  %s1614_s2 = smov [#allocation9]   ;;  %s1487_s30 = sshll.u32 %s1662_s3, 4  ;;  %s1488_s30 = int_to_ptr.hbm [resolvable:$true] %s1487_s30 }
   0xf   :  { %v321_v1 = vld [vmem:[#allocation6 + $0x1f8] sm:$0xff]  ;;  %548 = vmatpush.msra.mxu2 %v289_v0  ;;  %v319_v3 = vld [vmem:[#allocation6 + $0x1e8] sm:$0xff]  ;;  %v288_v6 = vld [vmem:[#allocation6 + $0xf0] sm:$0xff]  ;;  %s1485_s27 = sshll.u32 %s1614_s2, 4  ;;  %s1486_s27 = int_to_ptr.vmem [resolvable:$true] %s1485_s27 }
  0x10   :  { %661 = vmatpush.msra.mxu3 %v321_v1  ;;  %v285_v4 = vld [vmem:[#allocation6 + $0xd8] sm:$0xff]  ;;  %v320_v7 = vld [vmem:[#allocation6 + $0x1f0] sm:$0xff]  ;;  %v286_v8 = vld [vmem:[#allocation6 + $0xe0] sm:$0xff]  ;;  %322 = vmatpush.msra.mxu0 %v288_v6 }
  0x11   :  { %v317_v5 = vld [vmem:[#allocation6 + $0x1d8] sm:$0xff]  ;;  %549 = vmatpush.msra.mxu2 %v287_v2  ;;  %v318_v9 = vld [vmem:[#allocation6 + $0x1e0] sm:$0xff]  ;;  %435 = vmatpush.msra.mxu1 %v320_v7  ;;  %v283_v10 = vld [vmem:[#allocation6 + $0xc8] sm:$0xff] }
  0x12   :  { %662 = vmatpush.msra.mxu3 %v319_v3  ;;  %v315_v11 = vld [vmem:[#allocation6 + $0x1c8] sm:$0xff]  ;;  %v284_v12 = vld [vmem:[#allocation6 + $0xd0] sm:$0xff]  ;;  %323 = vmatpush.msra.mxu0 %v286_v8  ;;  %v281_v14 = vld [vmem:[#allocation6 + $0xb8] sm:$0xff] }
  0x13   :  { %550 = vmatpush.msra.mxu2 %v285_v4  ;;  %v316_v13 = vld [vmem:[#allocation6 + $0x1d0] sm:$0xff]  ;;  %436 = vmatpush.msra.mxu1 %v318_v9  ;;  %v313_v15 = vld [vmem:[#allocation6 + $0x1b8] sm:$0xff]  ;;  %v282_v16 = vld [vmem:[#allocation6 + $0xc0] sm:$0xff] }
  0x14   :  { %663 = vmatpush.msra.mxu3 %v317_v5  ;;  %v314_v17 = vld [vmem:[#allocation6 + $0x1c0] sm:$0xff]  ;;  %324 = vmatpush.msra.mxu0 %v284_v12  ;;  %v279_v18 = vld [vmem:[#allocation6 + $0xa8] sm:$0xff]  ;;  %v280_v20 = vld [vmem:[#allocation6 + $0xb0] sm:$0xff] }
  0x15   :  { %551 = vmatpush.msra.mxu2 %v283_v10  ;;  %437 = vmatpush.msra.mxu1 %v316_v13  ;;  %v311_v19 = vld [vmem:[#allocation6 + $0x1a8] sm:$0xff]  ;;  %v312_v21 = vld [vmem:[#allocation6 + $0x1b0] sm:$0xff]  ;;  %v277_v22 = vld [vmem:[#allocation6 + $0x98] sm:$0xff] }
  0x16   :  { %664 = vmatpush.msra.mxu3 %v315_v11  ;;  %325 = vmatpush.msra.mxu0 %v282_v16  ;;  %v309_v23 = vld [vmem:[#allocation6 + $0x198] sm:$0xff]  ;;  %v278_v24 = vld [vmem:[#allocation6 + $0xa0] sm:$0xff]  ;;  %v275_v26 = vld [vmem:[#allocation6 + $0x88] sm:$0xff] }
  0x17   :  { %552 = vmatpush.msra.mxu2 %v281_v14  ;;  %438 = vmatpush.msra.mxu1 %v314_v17  ;;  %v310_v25 = vld [vmem:[#allocation6 + $0x1a0] sm:$0xff]  ;;  %v307_v27 = vld [vmem:[#allocation6 + $0x188] sm:$0xff]  ;;  %v276_v28 = vld [vmem:[#allocation6 + $0x90] sm:$0xff] }
  0x18   :  { %665 = vmatpush.msra.mxu3 %v313_v15  ;;  %326 = vmatpush.msra.mxu0 %v280_v20  ;;  %v308_v29 = vld [vmem:[#allocation6 + $0x190] sm:$0xff]  ;;  %v273_v30 = vld [vmem:[#allocation6 + $0x78] sm:$0xff]  ;;  %v274_v32 = vld [vmem:[#allocation6 + $0x80] sm:$0xff] }
  0x19   :  { %553 = vmatpush.msra.mxu2 %v279_v18  ;;  %439 = vmatpush.msra.mxu1 %v312_v21  ;;  %v305_v31 = vld [vmem:[#allocation6 + $0x178] sm:$0xff]  ;;  %v306_v33 = vld [vmem:[#allocation6 + $0x180] sm:$0xff]  ;;  %v271_v34 = vld [vmem:[#allocation6 + $0x68] sm:$0xff] }
  0x1a   :  { %666 = vmatpush.msra.mxu3 %v311_v19  ;;  %327 = vmatpush.msra.mxu0 %v278_v24  ;;  %v303_v35 = vld [vmem:[#allocation6 + $0x168] sm:$0xff]  ;;  %v272_v36 = vld [vmem:[#allocation6 + $0x70] sm:$0xff]  ;;  %v269_v38 = vld [vmem:[#allocation6 + $0x58] sm:$0xff] }
  0x1b   :  { %554 = vmatpush.msra.mxu2 %v277_v22  ;;  %440 = vmatpush.msra.mxu1 %v310_v25  ;;  %v304_v37 = vld [vmem:[#allocation6 + $0x170] sm:$0xff]  ;;  %v301_v39 = vld [vmem:[#allocation6 + $0x158] sm:$0xff]  ;;  %v270_v40 = vld [vmem:[#allocation6 + $0x60] sm:$0xff] }
  0x1c   :  { %667 = vmatpush.msra.mxu3 %v309_v23  ;;  %328 = vmatpush.msra.mxu0 %v276_v28  ;;  %v302_v41 = vld [vmem:[#allocation6 + $0x160] sm:$0xff]  ;;  %v267_v42 = vld [vmem:[#allocation6 + $0x48] sm:$0xff]  ;;  %v268_v44 = vld [vmem:[#allocation6 + $0x50] sm:$0xff] }
  0x1d   :  { %555 = vmatpush.msra.mxu2 %v275_v26  ;;  %441 = vmatpush.msra.mxu1 %v308_v29  ;;  %v299_v43 = vld [vmem:[#allocation6 + $0x148] sm:$0xff]  ;;  %v300_v45 = vld [vmem:[#allocation6 + $0x150] sm:$0xff]  ;;  %v265_v46 = vld [vmem:[#allocation6 + $0x38] sm:$0xff] }
  0x1e   :  { %668 = vmatpush.msra.mxu3 %v307_v27  ;;  %329 = vmatpush.msra.mxu0 %v274_v32  ;;  %v297_v47 = vld [vmem:[#allocation6 + $0x138] sm:$0xff]  ;;  %v266_v48 = vld [vmem:[#allocation6 + $0x40] sm:$0xff]  ;;  %v263_v50 = vld [vmem:[#allocation6 + $0x28] sm:$0xff] }
  0x1f   :  { %556 = vmatpush.msra.mxu2 %v273_v30  ;;  %442 = vmatpush.msra.mxu1 %v306_v33  ;;  %v298_v49 = vld [vmem:[#allocation6 + $0x140] sm:$0xff]  ;;  %v295_v51 = vld [vmem:[#allocation6 + $0x128] sm:$0xff]  ;;  %v264_v52 = vld [vmem:[#allocation6 + $0x30] sm:$0xff] }
  0x20   :  { %669 = vmatpush.msra.mxu3 %v305_v31  ;;  %330 = vmatpush.msra.mxu0 %v272_v36  ;;  %v296_v53 = vld [vmem:[#allocation6 + $0x130] sm:$0xff]  ;;  %v261_v54 = vld [vmem:[#allocation6 + $0x18] sm:$0xff]  ;;  %v262_v56 = vld [vmem:[#allocation6 + $0x20] sm:$0xff] }
  0x21   :  { %557 = vmatpush.msra.mxu2 %v271_v34  ;;  %443 = vmatpush.msra.mxu1 %v304_v37  ;;  %v293_v55 = vld [vmem:[#allocation6 + $0x118] sm:$0xff]  ;;  %v294_v57 = vld [vmem:[#allocation6 + $0x120] sm:$0xff]  ;;  %v259_v58 = vld [vmem:[#allocation6 + $0x8] sm:$0xff] }
  0x22   :  { %670 = vmatpush.msra.mxu3 %v303_v35  ;;  %331 = vmatpush.msra.mxu0 %v270_v40  ;;  %v291_v59 = vld [vmem:[#allocation6 + $0x108] sm:$0xff]  ;;  %v194_v60 = vld [vmem:[#allocation3] sm:$0xff]  ;;  %v260_v62 = vld [vmem:[#allocation6 + $0x10] sm:$0xff] }
  0x23   :  { %558 = vmatpush.msra.mxu2 %v269_v38  ;;  %444 = vmatpush.msra.mxu1 %v302_v41  ;;  %v195_v61 = vld [vmem:[#allocation3 + $0x8] sm:$0xff]  ;;  %v292_v63 = vld [vmem:[#allocation6 + $0x110] sm:$0xff]  ;;  %v258_v0 = vld [vmem:[#allocation6] sm:$0xff] }
  0x24   :  { %671 = vmatpush.msra.mxu3 %v301_v39  ;;  %332 = vmatpush.msra.mxu0 %v268_v44  ;;  %v290_v1 = vld [vmem:[#allocation6 + $0x100] sm:$0xff]  ;;  %v196_v2 = vld [vmem:[#allocation3 + $0x10] sm:$0xff]  ;;  %v197_v3 = vld [vmem:[#allocation3 + $0x18] sm:$0xff] }
  0x25   :  { %559 = vmatpush.msra.mxu2 %v267_v42  ;;  %445 = vmatpush.msra.mxu1 %v300_v45  ;;  %v198_v4 = vld [vmem:[#allocation3 + $0x20] sm:$0xff]  ;;  %v199_v5 = vld [vmem:[#allocation3 + $0x28] sm:$0xff]  ;;  %v200_v6 = vld [vmem:[#allocation3 + $0x30] sm:$0xff] }
  0x26   :  { %672 = vmatpush.msra.mxu3 %v299_v43  ;;  %333 = vmatpush.msra.mxu0 %v266_v48  ;;  %v201_v7 = vld [vmem:[#allocation3 + $0x38] sm:$0xff]  ;;  %v202_v8 = vld [vmem:[#allocation3 + $0x40] sm:$0xff]  ;;  %v203_v9 = vld [vmem:[#allocation3 + $0x48] sm:$0xff] }
  0x27   :  { %560 = vmatpush.msra.mxu2 %v265_v46  ;;  %446 = vmatpush.msra.mxu1 %v298_v49  ;;  %v204_v10 = vld [vmem:[#allocation3 + $0x50] sm:$0xff]  ;;  %v205_v11 = vld [vmem:[#allocation3 + $0x58] sm:$0xff]  ;;  %v206_v12 = vld [vmem:[#allocation3 + $0x60] sm:$0xff] }
  0x28   :  { %673 = vmatpush.msra.mxu3 %v297_v47  ;;  %334 = vmatpush.msra.mxu0 %v264_v52  ;;  %v207_v13 = vld [vmem:[#allocation3 + $0x68] sm:$0xff]  ;;  %v208_v14 = vld [vmem:[#allocation3 + $0x70] sm:$0xff]  ;;  %v209_v15 = vld [vmem:[#allocation3 + $0x78] sm:$0xff] }
  0x29   :  { %561 = vmatpush.msra.mxu2 %v263_v50  ;;  %447 = vmatpush.msra.mxu1 %v296_v53  ;;  %v210_v16 = vld [vmem:[#allocation3 + $0x80] sm:$0xff]  ;;  %v211_v17 = vld [vmem:[#allocation3 + $0x88] sm:$0xff]  ;;  %v212_v18 = vld [vmem:[#allocation3 + $0x90] sm:$0xff] }
  0x2a   :  { %674 = vmatpush.msra.mxu3 %v295_v51  ;;  %335 = vmatpush.msra.mxu0 %v262_v56  ;;  %v213_v19 = vld [vmem:[#allocation3 + $0x98] sm:$0xff]  ;;  %v214_v20 = vld [vmem:[#allocation3 + $0xa0] sm:$0xff]  ;;  %v215_v21 = vld [vmem:[#allocation3 + $0xa8] sm:$0xff] }
  0x2b   :  { %562 = vmatpush.msra.mxu2 %v261_v54  ;;  %448 = vmatpush.msra.mxu1 %v294_v57  ;;  %v216_v22 = vld [vmem:[#allocation3 + $0xb0] sm:$0xff]  ;;  %v217_v23 = vld [vmem:[#allocation3 + $0xb8] sm:$0xff]  ;;  %v218_v24 = vld [vmem:[#allocation3 + $0xc0] sm:$0xff] }
  0x2c   :  { %675 = vmatpush.msra.mxu3 %v293_v55  ;;  %336 = vmatpush.msra.mxu0 %v260_v62  ;;  %v219_v25 = vld [vmem:[#allocation3 + $0xc8] sm:$0xff]  ;;  %v220_v26 = vld [vmem:[#allocation3 + $0xd0] sm:$0xff]  ;;  %v221_v27 = vld [vmem:[#allocation3 + $0xd8] sm:$0xff] }
  0x2d   :  { %563 = vmatpush.msra.mxu2 %v259_v58  ;;  %449 = vmatpush.msra.mxu1 %v292_v63  ;;  %v222_v28 = vld [vmem:[#allocation3 + $0xe0] sm:$0xff]  ;;  %v223_v29 = vld [vmem:[#allocation3 + $0xe8] sm:$0xff]  ;;  %v224_v30 = vld [vmem:[#allocation3 + $0xf0] sm:$0xff] }
  0x2e   :  { %676 = vmatpush.msra.mxu3 %v291_v59  ;;  %564 = vmatmul.f32.vlgmr.msra.gmra.mxu2 %v194_v60  ;;  %v225_v31 = vld [vmem:[#allocation3 + $0xf8] sm:$0xff]  ;;  %v226_v32 = vld [vmem:[#allocation3 + $0x100] sm:$0xff]  ;;  %v227_v33 = vld [vmem:[#allocation3 + $0x108] sm:$0xff] }
  0x2f   :  { %677 = vmatmul.f32.vlgmr.msra.gmra.mxu3 %v195_v61  ;;  %337 = vmatpush.msra.mxu0 %v258_v0  ;;  %v905_v36 = vld [vmem:[#allocation8] sm:$0xff]  ;;  %v906_v41 = vld [vmem:[#allocation8 + $0x8] sm:$0xff]  ;;  %v228_v46 = vld [vmem:[#allocation3 + $0x110] sm:$0xff] }
  0x30   :  { %450 = vmatpush.msra.mxu1 %v290_v1  ;;  %338 = vmatmul.f32.vlgmr.msra.gmra.mxu0 %v194_v60  ;;  %v969_v37 = vld [vmem:[#allocation8 + $0x200] sm:$0xff]  ;;  %v970_v42 = vld [vmem:[#allocation8 + $0x208] sm:$0xff]  ;;  %v229_v47 = vld [vmem:[#allocation3 + $0x118] sm:$0xff] }
  0x31   :  { %451 = vmatmul.f32.vlgmr.msra.gmra.mxu1 %v195_v61  ;;  %v907_v56 = vld [vmem:[#allocation8 + $0x10] sm:$0xff]  ;;  %v908_v61 = vld [vmem:[#allocation8 + $0x18] sm:$0xff] }
  0x32   :  { %v971_v57 = vld [vmem:[#allocation8 + $0x210] sm:$0xff]  ;;  %v972_v62 = vld [vmem:[#allocation8 + $0x218] sm:$0xff] }
  0x36   :  { %567 = vmatmul.f32.gmra.mxu2 %v196_v2 }
  0x37   :  { %680 = vmatmul.f32.gmra.mxu3 %v197_v3 }
  0x38   :  { %341 = vmatmul.f32.gmra.mxu0 %v196_v2  ;;  %v230_v2 = vld [vmem:[#allocation3 + $0x120] sm:$0xff] }
  0x39   :  { %454 = vmatmul.f32.gmra.mxu1 %v197_v3  ;;  %v231_v3 = vld [vmem:[#allocation3 + $0x128] sm:$0xff] }
  0x3e   :  { %570 = vmatmul.f32.gmra.mxu2 %v198_v4 }
  0x3f   :  { %683 = vmatmul.f32.gmra.mxu3 %v199_v5 }
  0x40   :  { %344 = vmatmul.f32.gmra.mxu0 %v198_v4 }
  0x41   :  { %457 = vmatmul.f32.gmra.mxu1 %v199_v5 }
  0x46   :  { %573 = vmatmul.f32.gmra.mxu2 %v200_v6 }
  0x47   :  { %686 = vmatmul.f32.gmra.mxu3 %v201_v7 }
  0x48   :  { %347 = vmatmul.f32.gmra.mxu0 %v200_v6 }
  0x49   :  { %460 = vmatmul.f32.gmra.mxu1 %v201_v7 }
  0x4e   :  { %576 = vmatmul.f32.gmra.mxu2 %v202_v8 }
  0x4f   :  { %689 = vmatmul.f32.gmra.mxu3 %v203_v9 }
  0x50   :  { %350 = vmatmul.f32.gmra.mxu0 %v202_v8 }
  0x51   :  { %463 = vmatmul.f32.gmra.mxu1 %v203_v9 }
  0x56   :  { %579 = vmatmul.f32.gmra.mxu2 %v204_v10 }
  0x57   :  { %692 = vmatmul.f32.gmra.mxu3 %v205_v11 }
  0x58   :  { %353 = vmatmul.f32.gmra.mxu0 %v204_v10 }
  0x59   :  { %466 = vmatmul.f32.gmra.mxu1 %v205_v11 }
  0x5e   :  { %582 = vmatmul.f32.gmra.mxu2 %v206_v12 }
  0x5f   :  { %695 = vmatmul.f32.gmra.mxu3 %v207_v13 }
  0x60   :  { %356 = vmatmul.f32.gmra.mxu0 %v206_v12  ;;  %v909_v12 = vld [vmem:[#allocation8 + $0x20] sm:$0xff] }
  0x61   :  { %469 = vmatmul.f32.gmra.mxu1 %v207_v13  ;;  %v973_v13 = vld [vmem:[#allocation8 + $0x220] sm:$0xff] }
  0x66   :  { %585 = vmatmul.f32.gmra.mxu2 %v208_v14 }
  0x67   :  { %698 = vmatmul.f32.gmra.mxu3 %v209_v15 }
  0x68   :  { %359 = vmatmul.f32.gmra.mxu0 %v208_v14 }
  0x69   :  { %472 = vmatmul.f32.gmra.mxu1 %v209_v15 }
  0x6e   :  { %588 = vmatmul.f32.gmra.mxu2 %v210_v16 }
  0x6f   :  { %701 = vmatmul.f32.gmra.mxu3 %v211_v17 }
  0x70   :  { %362 = vmatmul.f32.gmra.mxu0 %v210_v16 }
  0x71   :  { %475 = vmatmul.f32.gmra.mxu1 %v211_v17  ;;  %v910_v17 = vld [vmem:[#allocation8 + $0x28] sm:$0xff] }
  0x76   :  { %591 = vmatmul.f32.gmra.mxu2 %v212_v18 }
  0x77   :  { %704 = vmatmul.f32.gmra.mxu3 %v213_v19 }
  0x78   :  { %365 = vmatmul.f32.gmra.mxu0 %v212_v18  ;;  %v974_v18 = vld [vmem:[#allocation8 + $0x228] sm:$0xff] }
  0x79   :  { %478 = vmatmul.f32.gmra.mxu1 %v213_v19 }
  0x7e   :  { %594 = vmatmul.f32.gmra.mxu2 %v214_v20 }
  0x7f   :  { %707 = vmatmul.f32.gmra.mxu3 %v215_v21 }
  0x80   :  { %368 = vmatmul.f32.gmra.mxu0 %v214_v20 }
  0x81   :  { %481 = vmatmul.f32.gmra.mxu1 %v215_v21 }
  0x86   :  { %597 = vmatmul.f32.gmra.mxu2 %v216_v22 }
  0x87   :  { %710 = vmatmul.f32.gmra.mxu3 %v217_v23 }
  0x88   :  { %371 = vmatmul.f32.gmra.mxu0 %v216_v22  ;;  %v232_v22 = vld [vmem:[#allocation3 + $0x130] sm:$0xff] }
  0x89   :  { %484 = vmatmul.f32.gmra.mxu1 %v217_v23  ;;  %v233_v23 = vld [vmem:[#allocation3 + $0x138] sm:$0xff] }
  0x8e   :  { %600 = vmatmul.f32.gmra.mxu2 %v218_v24 }
  0x8f   :  { %713 = vmatmul.f32.gmra.mxu3 %v219_v25 }
  0x90   :  { %374 = vmatmul.f32.gmra.mxu0 %v218_v24 }
  0x91   :  { %487 = vmatmul.f32.gmra.mxu1 %v219_v25 }
  0x96   :  { %603 = vmatmul.f32.gmra.mxu2 %v220_v26 }
  0x97   :  { %716 = vmatmul.f32.gmra.mxu3 %v221_v27 }
  0x98   :  { %377 = vmatmul.f32.gmra.mxu0 %v220_v26 }
  0x99   :  { %490 = vmatmul.f32.gmra.mxu1 %v221_v27 }
  0x9e   :  { %606 = vmatmul.f32.gmra.mxu2 %v222_v28 }
  0x9f   :  { %719 = vmatmul.f32.gmra.mxu3 %v223_v29 }
  0xa0   :  { %380 = vmatmul.f32.gmra.mxu0 %v222_v28 }
  0xa1   :  { %493 = vmatmul.f32.gmra.mxu1 %v223_v29 }
  0xa6   :  { %609 = vmatmul.f32.gmra.mxu2 %v224_v30 }
  0xa7   :  { %722 = vmatmul.f32.gmra.mxu3 %v225_v31 }
  0xa8   :  { %383 = vmatmul.f32.gmra.mxu0 %v224_v30 }
  0xa9   :  { %496 = vmatmul.f32.gmra.mxu1 %v225_v31 }
  0xad   :  { %v339_v34 = vpop.f32.mrf.mxu0 }
  0xae   :  { %612 = vmatmul.f32.gmra.mxu2 %v226_v32  ;;  %v452_v35 = vpop.f32.mrf.mxu1 }
  0xaf   :  { %725 = vmatmul.f32.gmra.mxu3 %v227_v33  ;;  %v453_v38 = vadd.f32 %v452_v35, %v339_v34 }
  0xb0   :  { %386 = vmatmul.f32.gmra.mxu0 %v226_v32  ;;  %v911_v32 = vld [vmem:[#allocation8 + $0x30] sm:$0xff] }
  0xb1   :  { %v565_v39 = vpop.f32.mrf.mxu2  ;;  %v1097_v43 = vadd.f32 %v905_v36, %v453_v38  ;;  %v1161_v44 = vadd.f32 %v969_v37, %v453_v38  ;;  %499 = vmatmul.f32.gmra.mxu1 %v227_v33  ;;  %v975_v33 = vld [vmem:[#allocation8 + $0x230] sm:$0xff]  ;;  %v976_v38 = vld [vmem:[#allocation8 + $0x238] sm:$0xff] }
  0xb2   :  { %v678_v40 = vpop.f32.mrf.mxu3 }
  0xb3   :  { %v679_v45 = vadd.f32 %v678_v40, %v565_v39  ;;  %v1225_v48 = vadd.f32 %v1097_v43, %v905_v36  ;;  %v1289_v49 = vadd.f32 %v1161_v44, %v969_v37  ;;  %v912_v37 = vld [vmem:[#allocation8 + $0x38] sm:$0xff]  ;;  %v235_v43 = vld [vmem:[#allocation3 + $0x148] sm:$0xff] }
  0xb5   :  { %v1098_v50 = vadd.f32 %v906_v41, %v679_v45  ;;  %v1162_v51 = vadd.f32 %v970_v42, %v679_v45  ;;  %1353 = vst [vmem:[#allocation9] sm:$0xff] %v1225_v48  ;;  %v342_v54 = vpop.f32.mrf.mxu0 }
  0xb6   :  { %615 = vmatmul.f32.gmra.mxu2 %v228_v46  ;;  %1417 = vst [vmem:[#allocation9 + $0x200] sm:$0xff] %v1289_v49  ;;  %v455_v55 = vpop.f32.mrf.mxu1 }
  0xb7   :  { %v1226_v52 = vadd.f32 %v1098_v50, %v906_v41  ;;  %v1290_v53 = vadd.f32 %v1162_v51, %v970_v42  ;;  %728 = vmatmul.f32.gmra.mxu3 %v229_v47  ;;  %v456_v58 = vadd.f32 %v455_v55, %v342_v54  ;;  %v234_v42 = vld [vmem:[#allocation3 + $0x140] sm:$0xff] }
  0xb8   :  { %389 = vmatmul.f32.gmra.mxu0 %v228_v46 }
  0xb9   :  { %1354 = vst [vmem:[#allocation9 + $0x8] sm:$0xff] %v1226_v52  ;;  %v568_v59 = vpop.f32.mrf.mxu2  ;;  %v1099_v63 = vadd.f32 %v907_v56, %v456_v58  ;;  %v1163_v0 = vadd.f32 %v971_v57, %v456_v58  ;;  %502 = vmatmul.f32.gmra.mxu1 %v229_v47  ;;  %v913_v52 = vld [vmem:[#allocation8 + $0x40] sm:$0xff]  ;;  %v978_v58 = vld [vmem:[#allocation8 + $0x248] sm:$0xff] }
  0xba   :  { %1418 = vst [vmem:[#allocation9 + $0x208] sm:$0xff] %v1290_v53  ;;  %v681_v60 = vpop.f32.mrf.mxu3  ;;  %v977_v53 = vld [vmem:[#allocation8 + $0x240] sm:$0xff] }
  0xbb   :  { %v682_v1 = vadd.f32 %v681_v60, %v568_v59  ;;  %v1227_v4 = vadd.f32 %v1099_v63, %v907_v56  ;;  %v1291_v5 = vadd.f32 %v1163_v0, %v971_v57  ;;  %v914_v57 = vld [vmem:[#allocation8 + $0x48] sm:$0xff]  ;;  %v237_v63 = vld [vmem:[#allocation3 + $0x158] sm:$0xff] }
  0xbd   :  { %v1100_v6 = vadd.f32 %v908_v61, %v682_v1  ;;  %v1164_v7 = vadd.f32 %v972_v62, %v682_v1  ;;  %1355 = vst [vmem:[#allocation9 + $0x10] sm:$0xff] %v1227_v4  ;;  %v345_v10 = vpop.f32.mrf.mxu0 }
  0xbe   :  { %618 = vmatmul.f32.gmra.mxu2 %v230_v2  ;;  %1419 = vst [vmem:[#allocation9 + $0x210] sm:$0xff] %v1291_v5  ;;  %v458_v11 = vpop.f32.mrf.mxu1 }
  0xbf   :  { %v1228_v8 = vadd.f32 %v1100_v6, %v908_v61  ;;  %v1292_v9 = vadd.f32 %v1164_v7, %v972_v62  ;;  %731 = vmatmul.f32.gmra.mxu3 %v231_v3  ;;  %v459_v14 = vadd.f32 %v458_v11, %v345_v10  ;;  %v236_v62 = vld [vmem:[#allocation3 + $0x150] sm:$0xff] }
  0xc0   :  { %392 = vmatmul.f32.gmra.mxu0 %v230_v2 }
  0xc1   :  { %1356 = vst [vmem:[#allocation9 + $0x18] sm:$0xff] %v1228_v8  ;;  %v571_v15 = vpop.f32.mrf.mxu2  ;;  %v1101_v19 = vadd.f32 %v909_v12, %v459_v14  ;;  %v1165_v20 = vadd.f32 %v973_v13, %v459_v14  ;;  %505 = vmatmul.f32.gmra.mxu1 %v231_v3  ;;  %v915_v8 = vld [vmem:[#allocation8 + $0x50] sm:$0xff]  ;;  %v980_v14 = vld [vmem:[#allocation8 + $0x258] sm:$0xff] }
  0xc2   :  { %1420 = vst [vmem:[#allocation9 + $0x218] sm:$0xff] %v1292_v9  ;;  %v684_v16 = vpop.f32.mrf.mxu3  ;;  %v979_v9 = vld [vmem:[#allocation8 + $0x250] sm:$0xff] }
  0xc3   :  { %v685_v21 = vadd.f32 %v684_v16, %v571_v15  ;;  %v1229_v24 = vadd.f32 %v1101_v19, %v909_v12  ;;  %v1293_v25 = vadd.f32 %v1165_v20, %v973_v13  ;;  %v916_v13 = vld [vmem:[#allocation8 + $0x58] sm:$0xff]  ;;  %v239_v19 = vld [vmem:[#allocation3 + $0x168] sm:$0xff] }
  0xc5   :  { %v1102_v26 = vadd.f32 %v910_v17, %v685_v21  ;;  %v1166_v27 = vadd.f32 %v974_v18, %v685_v21  ;;  %1357 = vst [vmem:[#allocation9 + $0x20] sm:$0xff] %v1229_v24  ;;  %v348_v30 = vpop.f32.mrf.mxu0 }
  0xc6   :  { %621 = vmatmul.f32.gmra.mxu2 %v232_v22  ;;  %1421 = vst [vmem:[#allocation9 + $0x220] sm:$0xff] %v1293_v25  ;;  %v461_v31 = vpop.f32.mrf.mxu1 }
  0xc7   :  { %v1230_v28 = vadd.f32 %v1102_v26, %v910_v17  ;;  %v1294_v29 = vadd.f32 %v1166_v27, %v974_v18  ;;  %734 = vmatmul.f32.gmra.mxu3 %v233_v23  ;;  %v462_v34 = vadd.f32 %v461_v31, %v348_v30  ;;  %v238_v18 = vld [vmem:[#allocation3 + $0x160] sm:$0xff] }
  0xc8   :  { %395 = vmatmul.f32.gmra.mxu0 %v232_v22 }
  0xc9   :  { %1358 = vst [vmem:[#allocation9 + $0x28] sm:$0xff] %v1230_v28  ;;  %v574_v35 = vpop.f32.mrf.mxu2  ;;  %v1103_v39 = vadd.f32 %v911_v32, %v462_v34  ;;  %v1167_v40 = vadd.f32 %v975_v33, %v462_v34  ;;  %508 = vmatmul.f32.gmra.mxu1 %v233_v23  ;;  %v917_v28 = vld [vmem:[#allocation8 + $0x60] sm:$0xff]  ;;  %v982_v34 = vld [vmem:[#allocation8 + $0x268] sm:$0xff] }
  0xca   :  { %1422 = vst [vmem:[#allocation9 + $0x228] sm:$0xff] %v1294_v29  ;;  %v687_v36 = vpop.f32.mrf.mxu3  ;;  %v981_v29 = vld [vmem:[#allocation8 + $0x260] sm:$0xff] }
  0xcb   :  { %v688_v41 = vadd.f32 %v687_v36, %v574_v35  ;;  %v1231_v44 = vadd.f32 %v1103_v39, %v911_v32  ;;  %v1295_v45 = vadd.f32 %v1167_v40, %v975_v33  ;;  %v918_v33 = vld [vmem:[#allocation8 + $0x68] sm:$0xff]  ;;  %v241_v39 = vld [vmem:[#allocation3 + $0x178] sm:$0xff] }
  0xcd   :  { %v1104_v46 = vadd.f32 %v912_v37, %v688_v41  ;;  %v1168_v47 = vadd.f32 %v976_v38, %v688_v41  ;;  %1359 = vst [vmem:[#allocation9 + $0x30] sm:$0xff] %v1231_v44  ;;  %v351_v50 = vpop.f32.mrf.mxu0 }
  0xce   :  { %624 = vmatmul.f32.gmra.mxu2 %v234_v42  ;;  %1423 = vst [vmem:[#allocation9 + $0x230] sm:$0xff] %v1295_v45  ;;  %v464_v51 = vpop.f32.mrf.mxu1 }
  0xcf   :  { %v1232_v48 = vadd.f32 %v1104_v46, %v912_v37  ;;  %v1296_v49 = vadd.f32 %v1168_v47, %v976_v38  ;;  %737 = vmatmul.f32.gmra.mxu3 %v235_v43  ;;  %v465_v54 = vadd.f32 %v464_v51, %v351_v50  ;;  %v240_v38 = vld [vmem:[#allocation3 + $0x170] sm:$0xff] }
  0xd0   :  { %398 = vmatmul.f32.gmra.mxu0 %v234_v42 }
  0xd1   :  { %1360 = vst [vmem:[#allocation9 + $0x38] sm:$0xff] %v1232_v48  ;;  %v577_v55 = vpop.f32.mrf.mxu2  ;;  %v1105_v59 = vadd.f32 %v913_v52, %v465_v54  ;;  %v1169_v60 = vadd.f32 %v977_v53, %v465_v54  ;;  %511 = vmatmul.f32.gmra.mxu1 %v235_v43  ;;  %v919_v48 = vld [vmem:[#allocation8 + $0x70] sm:$0xff]  ;;  %v984_v54 = vld [vmem:[#allocation8 + $0x278] sm:$0xff] }
  0xd2   :  { %1424 = vst [vmem:[#allocation9 + $0x238] sm:$0xff] %v1296_v49  ;;  %v690_v56 = vpop.f32.mrf.mxu3  ;;  %v983_v49 = vld [vmem:[#allocation8 + $0x270] sm:$0xff] }
  0xd3   :  { %v691_v61 = vadd.f32 %v690_v56, %v577_v55  ;;  %v1233_v0 = vadd.f32 %v1105_v59, %v913_v52  ;;  %v1297_v1 = vadd.f32 %v1169_v60, %v977_v53  ;;  %v920_v53 = vld [vmem:[#allocation8 + $0x78] sm:$0xff]  ;;  %v243_v59 = vld [vmem:[#allocation3 + $0x188] sm:$0xff] }
  0xd5   :  { %v1106_v2 = vadd.f32 %v914_v57, %v691_v61  ;;  %v1170_v3 = vadd.f32 %v978_v58, %v691_v61  ;;  %1361 = vst [vmem:[#allocation9 + $0x40] sm:$0xff] %v1233_v0  ;;  %v354_v6 = vpop.f32.mrf.mxu0 }
  0xd6   :  { %627 = vmatmul.f32.gmra.mxu2 %v236_v62  ;;  %1425 = vst [vmem:[#allocation9 + $0x240] sm:$0xff] %v1297_v1  ;;  %v467_v7 = vpop.f32.mrf.mxu1 }
  0xd7   :  { %v1234_v4 = vadd.f32 %v1106_v2, %v914_v57  ;;  %v1298_v5 = vadd.f32 %v1170_v3, %v978_v58  ;;  %740 = vmatmul.f32.gmra.mxu3 %v237_v63  ;;  %v468_v10 = vadd.f32 %v467_v7, %v354_v6  ;;  %v242_v58 = vld [vmem:[#allocation3 + $0x180] sm:$0xff] }
  0xd8   :  { %401 = vmatmul.f32.gmra.mxu0 %v236_v62 }
  0xd9   :  { %1362 = vst [vmem:[#allocation9 + $0x48] sm:$0xff] %v1234_v4  ;;  %v580_v11 = vpop.f32.mrf.mxu2  ;;  %v1107_v15 = vadd.f32 %v915_v8, %v468_v10  ;;  %v1171_v16 = vadd.f32 %v979_v9, %v468_v10  ;;  %514 = vmatmul.f32.gmra.mxu1 %v237_v63  ;;  %v921_v4 = vld [vmem:[#allocation8 + $0x80] sm:$0xff]  ;;  %v986_v10 = vld [vmem:[#allocation8 + $0x288] sm:$0xff] }
  0xda   :  { %1426 = vst [vmem:[#allocation9 + $0x248] sm:$0xff] %v1298_v5  ;;  %v693_v12 = vpop.f32.mrf.mxu3  ;;  %v985_v5 = vld [vmem:[#allocation8 + $0x280] sm:$0xff] }
  0xdb   :  { %v694_v17 = vadd.f32 %v693_v12, %v580_v11  ;;  %v1235_v20 = vadd.f32 %v1107_v15, %v915_v8  ;;  %v1299_v21 = vadd.f32 %v1171_v16, %v979_v9  ;;  %v922_v9 = vld [vmem:[#allocation8 + $0x88] sm:$0xff]  ;;  %v245_v15 = vld [vmem:[#allocation3 + $0x198] sm:$0xff] }
  0xdd   :  { %v1108_v22 = vadd.f32 %v916_v13, %v694_v17  ;;  %v1172_v23 = vadd.f32 %v980_v14, %v694_v17  ;;  %1363 = vst [vmem:[#allocation9 + $0x50] sm:$0xff] %v1235_v20  ;;  %v357_v26 = vpop.f32.mrf.mxu0 }
  0xde   :  { %630 = vmatmul.f32.gmra.mxu2 %v238_v18  ;;  %1427 = vst [vmem:[#allocation9 + $0x250] sm:$0xff] %v1299_v21  ;;  %v470_v27 = vpop.f32.mrf.mxu1 }
  0xdf   :  { %v1236_v24 = vadd.f32 %v1108_v22, %v916_v13  ;;  %v1300_v25 = vadd.f32 %v1172_v23, %v980_v14  ;;  %743 = vmatmul.f32.gmra.mxu3 %v239_v19  ;;  %v471_v30 = vadd.f32 %v470_v27, %v357_v26  ;;  %v244_v14 = vld [vmem:[#allocation3 + $0x190] sm:$0xff] }
  0xe0   :  { %404 = vmatmul.f32.gmra.mxu0 %v238_v18 }
  0xe1   :  { %1364 = vst [vmem:[#allocation9 + $0x58] sm:$0xff] %v1236_v24  ;;  %v583_v31 = vpop.f32.mrf.mxu2  ;;  %v1109_v35 = vadd.f32 %v917_v28, %v471_v30  ;;  %v1173_v36 = vadd.f32 %v981_v29, %v471_v30  ;;  %517 = vmatmul.f32.gmra.mxu1 %v239_v19  ;;  %v923_v24 = vld [vmem:[#allocation8 + $0x90] sm:$0xff]  ;;  %v988_v30 = vld [vmem:[#allocation8 + $0x298] sm:$0xff] }
  0xe2   :  { %1428 = vst [vmem:[#allocation9 + $0x258] sm:$0xff] %v1300_v25  ;;  %v696_v32 = vpop.f32.mrf.mxu3  ;;  %v987_v25 = vld [vmem:[#allocation8 + $0x290] sm:$0xff] }
  0xe3   :  { %v697_v37 = vadd.f32 %v696_v32, %v583_v31  ;;  %v1237_v40 = vadd.f32 %v1109_v35, %v917_v28  ;;  %v1301_v41 = vadd.f32 %v1173_v36, %v981_v29  ;;  %v924_v29 = vld [vmem:[#allocation8 + $0x98] sm:$0xff]  ;;  %v247_v35 = vld [vmem:[#allocation3 + $0x1a8] sm:$0xff] }
  0xe5   :  { %v1110_v42 = vadd.f32 %v918_v33, %v697_v37  ;;  %v1174_v43 = vadd.f32 %v982_v34, %v697_v37  ;;  %1365 = vst [vmem:[#allocation9 + $0x60] sm:$0xff] %v1237_v40  ;;  %v360_v46 = vpop.f32.mrf.mxu0 }
  0xe6   :  { %633 = vmatmul.f32.gmra.mxu2 %v240_v38  ;;  %1429 = vst [vmem:[#allocation9 + $0x260] sm:$0xff] %v1301_v41  ;;  %v473_v47 = vpop.f32.mrf.mxu1 }
  0xe7   :  { %v1238_v44 = vadd.f32 %v1110_v42, %v918_v33  ;;  %v1302_v45 = vadd.f32 %v1174_v43, %v982_v34  ;;  %746 = vmatmul.f32.gmra.mxu3 %v241_v39  ;;  %v474_v50 = vadd.f32 %v473_v47, %v360_v46  ;;  %v246_v34 = vld [vmem:[#allocation3 + $0x1a0] sm:$0xff] }
  0xe8   :  { %407 = vmatmul.f32.gmra.mxu0 %v240_v38 }
  0xe9   :  { %1366 = vst [vmem:[#allocation9 + $0x68] sm:$0xff] %v1238_v44  ;;  %v586_v51 = vpop.f32.mrf.mxu2  ;;  %v1111_v55 = vadd.f32 %v919_v48, %v474_v50  ;;  %v1175_v56 = vadd.f32 %v983_v49, %v474_v50  ;;  %520 = vmatmul.f32.gmra.mxu1 %v241_v39  ;;  %v925_v44 = vld [vmem:[#allocation8 + $0xa0] sm:$0xff]  ;;  %v990_v50 = vld [vmem:[#allocation8 + $0x2a8] sm:$0xff] }
  0xea   :  { %1430 = vst [vmem:[#allocation9 + $0x268] sm:$0xff] %v1302_v45  ;;  %v699_v52 = vpop.f32.mrf.mxu3  ;;  %v989_v45 = vld [vmem:[#allocation8 + $0x2a0] sm:$0xff] }
  0xeb   :  { %v700_v57 = vadd.f32 %v699_v52, %v586_v51  ;;  %v1239_v60 = vadd.f32 %v1111_v55, %v919_v48  ;;  %v1303_v61 = vadd.f32 %v1175_v56, %v983_v49  ;;  %v926_v49 = vld [vmem:[#allocation8 + $0xa8] sm:$0xff]  ;;  %v249_v55 = vld [vmem:[#allocation3 + $0x1b8] sm:$0xff] }
  0xed   :  { %v1112_v62 = vadd.f32 %v920_v53, %v700_v57  ;;  %v1176_v63 = vadd.f32 %v984_v54, %v700_v57  ;;  %1367 = vst [vmem:[#allocation9 + $0x70] sm:$0xff] %v1239_v60  ;;  %v363_v2 = vpop.f32.mrf.mxu0 }
  0xee   :  { %636 = vmatmul.f32.gmra.mxu2 %v242_v58  ;;  %1431 = vst [vmem:[#allocation9 + $0x270] sm:$0xff] %v1303_v61  ;;  %v476_v3 = vpop.f32.mrf.mxu1 }
  0xef   :  { %v1240_v0 = vadd.f32 %v1112_v62, %v920_v53  ;;  %v1304_v1 = vadd.f32 %v1176_v63, %v984_v54  ;;  %749 = vmatmul.f32.gmra.mxu3 %v243_v59  ;;  %v477_v6 = vadd.f32 %v476_v3, %v363_v2  ;;  %v248_v54 = vld [vmem:[#allocation3 + $0x1b0] sm:$0xff] }
  0xf0   :  { %410 = vmatmul.f32.gmra.mxu0 %v242_v58 }
  0xf1   :  { %1368 = vst [vmem:[#allocation9 + $0x78] sm:$0xff] %v1240_v0  ;;  %v589_v7 = vpop.f32.mrf.mxu2  ;;  %v1113_v11 = vadd.f32 %v921_v4, %v477_v6  ;;  %v1177_v12 = vadd.f32 %v985_v5, %v477_v6  ;;  %523 = vmatmul.f32.gmra.mxu1 %v243_v59  ;;  %v927_v0 = vld [vmem:[#allocation8 + $0xb0] sm:$0xff]  ;;  %v992_v6 = vld [vmem:[#allocation8 + $0x2b8] sm:$0xff] }
  0xf2   :  { %1432 = vst [vmem:[#allocation9 + $0x278] sm:$0xff] %v1304_v1  ;;  %v702_v8 = vpop.f32.mrf.mxu3  ;;  %v991_v1 = vld [vmem:[#allocation8 + $0x2b0] sm:$0xff] }
  0xf3   :  { %v703_v13 = vadd.f32 %v702_v8, %v589_v7  ;;  %v1241_v16 = vadd.f32 %v1113_v11, %v921_v4  ;;  %v1305_v17 = vadd.f32 %v1177_v12, %v985_v5  ;;  %v928_v5 = vld [vmem:[#allocation8 + $0xb8] sm:$0xff]  ;;  %v251_v11 = vld [vmem:[#allocation3 + $0x1c8] sm:$0xff] }
  0xf5   :  { %v1114_v18 = vadd.f32 %v922_v9, %v703_v13  ;;  %v1178_v19 = vadd.f32 %v986_v10, %v703_v13  ;;  %1369 = vst [vmem:[#allocation9 + $0x80] sm:$0xff] %v1241_v16  ;;  %v366_v22 = vpop.f32.mrf.mxu0 }
  0xf6   :  { %639 = vmatmul.f32.gmra.mxu2 %v244_v14  ;;  %1433 = vst [vmem:[#allocation9 + $0x280] sm:$0xff] %v1305_v17  ;;  %v479_v23 = vpop.f32.mrf.mxu1 }
  0xf7   :  { %v1242_v20 = vadd.f32 %v1114_v18, %v922_v9  ;;  %v1306_v21 = vadd.f32 %v1178_v19, %v986_v10  ;;  %752 = vmatmul.f32.gmra.mxu3 %v245_v15  ;;  %v480_v26 = vadd.f32 %v479_v23, %v366_v22  ;;  %v250_v10 = vld [vmem:[#allocation3 + $0x1c0] sm:$0xff] }
  0xf8   :  { %413 = vmatmul.f32.gmra.mxu0 %v244_v14 }
  0xf9   :  { %1370 = vst [vmem:[#allocation9 + $0x88] sm:$0xff] %v1242_v20  ;;  %v592_v27 = vpop.f32.mrf.mxu2  ;;  %v1115_v31 = vadd.f32 %v923_v24, %v480_v26  ;;  %v1179_v32 = vadd.f32 %v987_v25, %v480_v26  ;;  %526 = vmatmul.f32.gmra.mxu1 %v245_v15  ;;  %v929_v20 = vld [vmem:[#allocation8 + $0xc0] sm:$0xff]  ;;  %v994_v26 = vld [vmem:[#allocation8 + $0x2c8] sm:$0xff] }
  0xfa   :  { %1434 = vst [vmem:[#allocation9 + $0x288] sm:$0xff] %v1306_v21  ;;  %v705_v28 = vpop.f32.mrf.mxu3  ;;  %v993_v21 = vld [vmem:[#allocation8 + $0x2c0] sm:$0xff] }
  0xfb   :  { %v706_v33 = vadd.f32 %v705_v28, %v592_v27  ;;  %v1243_v36 = vadd.f32 %v1115_v31, %v923_v24  ;;  %v1307_v37 = vadd.f32 %v1179_v32, %v987_v25  ;;  %v930_v25 = vld [vmem:[#allocation8 + $0xc8] sm:$0xff]  ;;  %v253_v31 = vld [vmem:[#allocation3 + $0x1d8] sm:$0xff] }
  0xfd   :  { %v1116_v38 = vadd.f32 %v924_v29, %v706_v33  ;;  %v1180_v39 = vadd.f32 %v988_v30, %v706_v33  ;;  %1371 = vst [vmem:[#allocation9 + $0x90] sm:$0xff] %v1243_v36  ;;  %v369_v42 = vpop.f32.mrf.mxu0 }
  0xfe   :  { %642 = vmatmul.f32.gmra.mxu2 %v246_v34  ;;  %1435 = vst [vmem:[#allocation9 + $0x290] sm:$0xff] %v1307_v37  ;;  %v482_v43 = vpop.f32.mrf.mxu1 }
  0xff   :  { %v1244_v40 = vadd.f32 %v1116_v38, %v924_v29  ;;  %v1308_v41 = vadd.f32 %v1180_v39, %v988_v30  ;;  %755 = vmatmul.f32.gmra.mxu3 %v247_v35  ;;  %v483_v46 = vadd.f32 %v482_v43, %v369_v42  ;;  %v252_v30 = vld [vmem:[#allocation3 + $0x1d0] sm:$0xff] }
 0x100   :  { %416 = vmatmul.f32.gmra.mxu0 %v246_v34 }
 0x101   :  { %1372 = vst [vmem:[#allocation9 + $0x98] sm:$0xff] %v1244_v40  ;;  %v595_v47 = vpop.f32.mrf.mxu2  ;;  %v1117_v51 = vadd.f32 %v925_v44, %v483_v46  ;;  %v1181_v52 = vadd.f32 %v989_v45, %v483_v46  ;;  %529 = vmatmul.f32.gmra.mxu1 %v247_v35  ;;  %v931_v40 = vld [vmem:[#allocation8 + $0xd0] sm:$0xff]  ;;  %v996_v46 = vld [vmem:[#allocation8 + $0x2d8] sm:$0xff] }
 0x102   :  { %1436 = vst [vmem:[#allocation9 + $0x298] sm:$0xff] %v1308_v41  ;;  %v708_v48 = vpop.f32.mrf.mxu3  ;;  %v995_v41 = vld [vmem:[#allocation8 + $0x2d0] sm:$0xff] }
 0x103   :  { %v709_v53 = vadd.f32 %v708_v48, %v595_v47  ;;  %v1245_v56 = vadd.f32 %v1117_v51, %v925_v44  ;;  %v1309_v57 = vadd.f32 %v1181_v52, %v989_v45  ;;  %v932_v45 = vld [vmem:[#allocation8 + $0xd8] sm:$0xff]  ;;  %v255_v51 = vld [vmem:[#allocation3 + $0x1e8] sm:$0xff] }
 0x105   :  { %v1118_v58 = vadd.f32 %v926_v49, %v709_v53  ;;  %v1182_v59 = vadd.f32 %v990_v50, %v709_v53  ;;  %1373 = vst [vmem:[#allocation9 + $0xa0] sm:$0xff] %v1245_v56  ;;  %v372_v62 = vpop.f32.mrf.mxu0 }
 0x106   :  { %645 = vmatmul.f32.gmra.mxu2 %v248_v54  ;;  %1437 = vst [vmem:[#allocation9 + $0x2a0] sm:$0xff] %v1309_v57  ;;  %v485_v63 = vpop.f32.mrf.mxu1 }
 0x107   :  { %v1246_v60 = vadd.f32 %v1118_v58, %v926_v49  ;;  %v1310_v61 = vadd.f32 %v1182_v59, %v990_v50  ;;  %758 = vmatmul.f32.gmra.mxu3 %v249_v55  ;;  %v486_v2 = vadd.f32 %v485_v63, %v372_v62  ;;  %v254_v50 = vld [vmem:[#allocation3 + $0x1e0] sm:$0xff] }
 0x108   :  { %419 = vmatmul.f32.gmra.mxu0 %v248_v54 }
 0x109   :  { %1374 = vst [vmem:[#allocation9 + $0xa8] sm:$0xff] %v1246_v60  ;;  %v598_v3 = vpop.f32.mrf.mxu2  ;;  %v1119_v7 = vadd.f32 %v927_v0, %v486_v2  ;;  %v1183_v8 = vadd.f32 %v991_v1, %v486_v2  ;;  %532 = vmatmul.f32.gmra.mxu1 %v249_v55  ;;  %v933_v60 = vld [vmem:[#allocation8 + $0xe0] sm:$0xff]  ;;  %v998_v2 = vld [vmem:[#allocation8 + $0x2e8] sm:$0xff] }
 0x10a   :  { %1438 = vst [vmem:[#allocation9 + $0x2a8] sm:$0xff] %v1310_v61  ;;  %v711_v4 = vpop.f32.mrf.mxu3  ;;  %v997_v61 = vld [vmem:[#allocation8 + $0x2e0] sm:$0xff] }
 0x10b   :  { %v712_v9 = vadd.f32 %v711_v4, %v598_v3  ;;  %v1247_v12 = vadd.f32 %v1119_v7, %v927_v0  ;;  %v1311_v13 = vadd.f32 %v1183_v8, %v991_v1  ;;  %v934_v1 = vld [vmem:[#allocation8 + $0xe8] sm:$0xff]  ;;  %v257_v7 = vld [vmem:[#allocation3 + $0x1f8] sm:$0xff] }
 0x10d   :  { %v1120_v14 = vadd.f32 %v928_v5, %v712_v9  ;;  %v1184_v15 = vadd.f32 %v992_v6, %v712_v9  ;;  %1375 = vst [vmem:[#allocation9 + $0xb0] sm:$0xff] %v1247_v12  ;;  %v375_v18 = vpop.f32.mrf.mxu0 }
 0x10e   :  { %648 = vmatmul.f32.gmra.mxu2 %v250_v10  ;;  %1439 = vst [vmem:[#allocation9 + $0x2b0] sm:$0xff] %v1311_v13  ;;  %v488_v19 = vpop.f32.mrf.mxu1 }
 0x10f   :  { %v1248_v16 = vadd.f32 %v1120_v14, %v928_v5  ;;  %v1312_v17 = vadd.f32 %v1184_v15, %v992_v6  ;;  %761 = vmatmul.f32.gmra.mxu3 %v251_v11  ;;  %v489_v22 = vadd.f32 %v488_v19, %v375_v18  ;;  %v256_v6 = vld [vmem:[#allocation3 + $0x1f0] sm:$0xff] }
 0x110   :  { %422 = vmatmul.f32.gmra.mxu0 %v250_v10 }
 0x111   :  { %1376 = vst [vmem:[#allocation9 + $0xb8] sm:$0xff] %v1248_v16  ;;  %v601_v23 = vpop.f32.mrf.mxu2  ;;  %v1121_v27 = vadd.f32 %v929_v20, %v489_v22  ;;  %v1185_v28 = vadd.f32 %v993_v21, %v489_v22  ;;  %535 = vmatmul.f32.gmra.mxu1 %v251_v11  ;;  %v935_v16 = vld [vmem:[#allocation8 + $0xf0] sm:$0xff]  ;;  %v1000_v22 = vld [vmem:[#allocation8 + $0x2f8] sm:$0xff] }
 0x112   :  { %1440 = vst [vmem:[#allocation9 + $0x2b8] sm:$0xff] %v1312_v17  ;;  %v714_v24 = vpop.f32.mrf.mxu3  ;;  %v999_v17 = vld [vmem:[#allocation8 + $0x2f0] sm:$0xff] }
 0x113   :  { %v715_v29 = vadd.f32 %v714_v24, %v601_v23  ;;  %v1249_v32 = vadd.f32 %v1121_v27, %v929_v20  ;;  %v1313_v33 = vadd.f32 %v1185_v28, %v993_v21  ;;  %v936_v21 = vld [vmem:[#allocation8 + $0xf8] sm:$0xff] }
 0x115   :  { %v1122_v34 = vadd.f32 %v930_v25, %v715_v29  ;;  %v1186_v35 = vadd.f32 %v994_v26, %v715_v29  ;;  %1377 = vst [vmem:[#allocation9 + $0xc0] sm:$0xff] %v1249_v32  ;;  %v378_v38 = vpop.f32.mrf.mxu0 }
 0x116   :  { %651 = vmatmul.f32.gmra.mxu2 %v252_v30  ;;  %1441 = vst [vmem:[#allocation9 + $0x2c0] sm:$0xff] %v1313_v33  ;;  %v491_v39 = vpop.f32.mrf.mxu1 }
 0x117   :  { %v1250_v36 = vadd.f32 %v1122_v34, %v930_v25  ;;  %v1314_v37 = vadd.f32 %v1186_v35, %v994_v26  ;;  %764 = vmatmul.f32.gmra.mxu3 %v253_v31  ;;  %v492_v42 = vadd.f32 %v491_v39, %v378_v38  ;;  %v937_v34 = vld [vmem:[#allocation8 + $0x100] sm:$0xff]  ;;  %v938_v39 = vld [vmem:[#allocation8 + $0x108] sm:$0xff] }
 0x118   :  { %425 = vmatmul.f32.gmra.mxu0 %v252_v30  ;;  %v1001_v35 = vld [vmem:[#allocation8 + $0x300] sm:$0xff] }
 0x119   :  { %1378 = vst [vmem:[#allocation9 + $0xc8] sm:$0xff] %v1250_v36  ;;  %v604_v43 = vpop.f32.mrf.mxu2  ;;  %v1123_v47 = vadd.f32 %v931_v40, %v492_v42  ;;  %v1187_v48 = vadd.f32 %v995_v41, %v492_v42  ;;  %538 = vmatmul.f32.gmra.mxu1 %v253_v31 }
 0x11a   :  { %1442 = vst [vmem:[#allocation9 + $0x2c8] sm:$0xff] %v1314_v37  ;;  %v717_v44 = vpop.f32.mrf.mxu3 }
 0x11b   :  { %v718_v49 = vadd.f32 %v717_v44, %v604_v43  ;;  %v1251_v52 = vadd.f32 %v1123_v47, %v931_v40  ;;  %v1315_v53 = vadd.f32 %v1187_v48, %v995_v41  ;;  %v1002_v40 = vld [vmem:[#allocation8 + $0x308] sm:$0xff] }
 0x11d   :  { %v1124_v54 = vadd.f32 %v932_v45, %v718_v49  ;;  %v1188_v55 = vadd.f32 %v996_v46, %v718_v49  ;;  %1379 = vst [vmem:[#allocation9 + $0xd0] sm:$0xff] %v1251_v52  ;;  %v381_v58 = vpop.f32.mrf.mxu0  ;;  %v939_v52 = vld [vmem:[#allocation8 + $0x110] sm:$0xff] }
 0x11e   :  { %654 = vmatmul.f32.gmra.mxu2 %v254_v50  ;;  %1443 = vst [vmem:[#allocation9 + $0x2d0] sm:$0xff] %v1315_v53  ;;  %v494_v59 = vpop.f32.mrf.mxu1  ;;  %v1003_v53 = vld [vmem:[#allocation8 + $0x310] sm:$0xff] }
 0x11f   :  { %v1252_v56 = vadd.f32 %v1124_v54, %v932_v45  ;;  %v1316_v57 = vadd.f32 %v1188_v55, %v996_v46  ;;  %767 = vmatmul.f32.gmra.mxu3 %v255_v51  ;;  %v495_v62 = vadd.f32 %v494_v59, %v381_v58  ;;  %v1004_v58 = vld [vmem:[#allocation8 + $0x318] sm:$0xff] }
 0x120   :  { %428 = vmatmul.f32.gmra.mxu0 %v254_v50 }
 0x121   :  { %1380 = vst [vmem:[#allocation9 + $0xd8] sm:$0xff] %v1252_v56  ;;  %v607_v63 = vpop.f32.mrf.mxu2  ;;  %v1125_v3 = vadd.f32 %v933_v60, %v495_v62  ;;  %v1189_v4 = vadd.f32 %v997_v61, %v495_v62  ;;  %541 = vmatmul.f32.gmra.mxu1 %v255_v51 }
 0x122   :  { %1444 = vst [vmem:[#allocation9 + $0x2d8] sm:$0xff] %v1316_v57  ;;  %v720_v0 = vpop.f32.mrf.mxu3  ;;  %v940_v57 = vld [vmem:[#allocation8 + $0x118] sm:$0xff] }
 0x123   :  { %v721_v5 = vadd.f32 %v720_v0, %v607_v63  ;;  %v1253_v8 = vadd.f32 %v1125_v3, %v933_v60  ;;  %v1317_v9 = vadd.f32 %v1189_v4, %v997_v61 }
 0x125   :  { %v1126_v10 = vadd.f32 %v934_v1, %v721_v5  ;;  %v1190_v11 = vadd.f32 %v998_v2, %v721_v5  ;;  %1381 = vst [vmem:[#allocation9 + $0xe0] sm:$0xff] %v1253_v8  ;;  %v384_v14 = vpop.f32.mrf.mxu0 }
 0x126   :  { %657 = vmatmul.f32.gmra.mxu2 %v256_v6  ;;  %1445 = vst [vmem:[#allocation9 + $0x2e0] sm:$0xff] %v1317_v9  ;;  %v497_v15 = vpop.f32.mrf.mxu1 }
 0x127   :  { %v1254_v12 = vadd.f32 %v1126_v10, %v934_v1  ;;  %v1318_v13 = vadd.f32 %v1190_v11, %v998_v2  ;;  %770 = vmatmul.f32.gmra.mxu3 %v257_v7  ;;  %v498_v18 = vadd.f32 %v497_v15, %v384_v14  ;;  %v942_v11 = vld [vmem:[#allocation8 + $0x128] sm:$0xff] }
 0x128   :  { %431 = vmatmul.f32.gmra.mxu0 %v256_v6  ;;  %v941_v6 = vld [vmem:[#allocation8 + $0x120] sm:$0xff] }
 0x129   :  { %1382 = vst [vmem:[#allocation9 + $0xe8] sm:$0xff] %v1254_v12  ;;  %v610_v19 = vpop.f32.mrf.mxu2  ;;  %v1127_v23 = vadd.f32 %v935_v16, %v498_v18  ;;  %v1191_v24 = vadd.f32 %v999_v17, %v498_v18  ;;  %544 = vmatmul.f32.gmra.mxu1 %v257_v7  ;;  %v1005_v7 = vld [vmem:[#allocation8 + $0x320] sm:$0xff]  ;;  %v1006_v12 = vld [vmem:[#allocation8 + $0x328] sm:$0xff] }
 0x12a   :  { %1446 = vst [vmem:[#allocation9 + $0x2e8] sm:$0xff] %v1318_v13  ;;  %v723_v20 = vpop.f32.mrf.mxu3 }
 0x12b   :  { %v724_v25 = vadd.f32 %v723_v20, %v610_v19  ;;  %v1255_v26 = vadd.f32 %v1127_v23, %v935_v16  ;;  %v1319_v27 = vadd.f32 %v1191_v24, %v999_v17  ;;  %v943_v24 = vld [vmem:[#allocation8 + $0x130] sm:$0xff] }
 0x12d   :  { %v1128_v28 = vadd.f32 %v936_v21, %v724_v25  ;;  %v1192_v29 = vadd.f32 %v1000_v22, %v724_v25  ;;  %1383 = vst [vmem:[#allocation9 + $0xf0] sm:$0xff] %v1255_v26  ;;  %v387_v32 = vpop.f32.mrf.mxu0  ;;  %v1007_v25 = vld [vmem:[#allocation8 + $0x330] sm:$0xff] }
 0x12e   :  { %1447 = vst [vmem:[#allocation9 + $0x2f0] sm:$0xff] %v1319_v27  ;;  %v500_v33 = vpop.f32.mrf.mxu1 }
 0x12f   :  { %v1256_v30 = vadd.f32 %v1128_v28, %v936_v21  ;;  %v1320_v31 = vadd.f32 %v1192_v29, %v1000_v22  ;;  %v501_v36 = vadd.f32 %v500_v33, %v387_v32  ;;  %v944_v29 = vld [vmem:[#allocation8 + $0x138] sm:$0xff] }
 0x131   :  { %1384 = vst [vmem:[#allocation9 + $0xf8] sm:$0xff] %v1256_v30  ;;  %v613_v37 = vpop.f32.mrf.mxu2  ;;  %v1129_v41 = vadd.f32 %v937_v34, %v501_v36  ;;  %v1193_v42 = vadd.f32 %v1001_v35, %v501_v36  ;;  %v1008_v30 = vld [vmem:[#allocation8 + $0x338] sm:$0xff] }
 0x132   :  { %1448 = vst [vmem:[#allocation9 + $0x2f8] sm:$0xff] %v1320_v31  ;;  %v726_v38 = vpop.f32.mrf.mxu3 }
 0x133   :  { %v727_v43 = vadd.f32 %v726_v38, %v613_v37  ;;  %v1257_v44 = vadd.f32 %v1129_v41, %v937_v34  ;;  %v1321_v45 = vadd.f32 %v1193_v42, %v1001_v35  ;;  %v945_v42 = vld [vmem:[#allocation8 + $0x140] sm:$0xff] }
 0x135   :  { %v1130_v46 = vadd.f32 %v938_v39, %v727_v43  ;;  %v1194_v47 = vadd.f32 %v1002_v40, %v727_v43  ;;  %1385 = vst [vmem:[#allocation9 + $0x100] sm:$0xff] %v1257_v44  ;;  %v390_v50 = vpop.f32.mrf.mxu0  ;;  %v1009_v43 = vld [vmem:[#allocation8 + $0x340] sm:$0xff] }
 0x136   :  { %1449 = vst [vmem:[#allocation9 + $0x300] sm:$0xff] %v1321_v45  ;;  %v503_v51 = vpop.f32.mrf.mxu1 }
 0x137   :  { %v1258_v48 = vadd.f32 %v1130_v46, %v938_v39  ;;  %v1322_v49 = vadd.f32 %v1194_v47, %v1002_v40  ;;  %v504_v54 = vadd.f32 %v503_v51, %v390_v50  ;;  %v946_v47 = vld [vmem:[#allocation8 + $0x148] sm:$0xff] }
 0x139   :  { %1386 = vst [vmem:[#allocation9 + $0x108] sm:$0xff] %v1258_v48  ;;  %v616_v55 = vpop.f32.mrf.mxu2  ;;  %v1131_v59 = vadd.f32 %v939_v52, %v504_v54  ;;  %v1195_v60 = vadd.f32 %v1003_v53, %v504_v54  ;;  %v1010_v48 = vld [vmem:[#allocation8 + $0x348] sm:$0xff] }
 0x13a   :  { %1450 = vst [vmem:[#allocation9 + $0x308] sm:$0xff] %v1322_v49  ;;  %v729_v56 = vpop.f32.mrf.mxu3 }
 0x13b   :  { %v730_v61 = vadd.f32 %v729_v56, %v616_v55  ;;  %v1259_v62 = vadd.f32 %v1131_v59, %v939_v52  ;;  %v1323_v63 = vadd.f32 %v1195_v60, %v1003_v53  ;;  %v947_v60 = vld [vmem:[#allocation8 + $0x150] sm:$0xff] }
 0x13d   :  { %v1132_v0 = vadd.f32 %v940_v57, %v730_v61  ;;  %v1196_v1 = vadd.f32 %v1004_v58, %v730_v61  ;;  %1387 = vst [vmem:[#allocation9 + $0x110] sm:$0xff] %v1259_v62  ;;  %v393_v4 = vpop.f32.mrf.mxu0  ;;  %v1011_v61 = vld [vmem:[#allocation8 + $0x350] sm:$0xff] }
 0x13e   :  { %1451 = vst [vmem:[#allocation9 + $0x310] sm:$0xff] %v1323_v63  ;;  %v506_v5 = vpop.f32.mrf.mxu1 }
 0x13f   :  { %v1260_v2 = vadd.f32 %v1132_v0, %v940_v57  ;;  %v1324_v3 = vadd.f32 %v1196_v1, %v1004_v58  ;;  %v507_v8 = vadd.f32 %v506_v5, %v393_v4  ;;  %v948_v1 = vld [vmem:[#allocation8 + $0x158] sm:$0xff] }
 0x141   :  { %1388 = vst [vmem:[#allocation9 + $0x118] sm:$0xff] %v1260_v2  ;;  %v619_v9 = vpop.f32.mrf.mxu2  ;;  %v1133_v13 = vadd.f32 %v941_v6, %v507_v8  ;;  %v1197_v14 = vadd.f32 %v1005_v7, %v507_v8  ;;  %v1012_v2 = vld [vmem:[#allocation8 + $0x358] sm:$0xff] }
 0x142   :  { %1452 = vst [vmem:[#allocation9 + $0x318] sm:$0xff] %v1324_v3  ;;  %v732_v10 = vpop.f32.mrf.mxu3 }
 0x143   :  { %v733_v15 = vadd.f32 %v732_v10, %v619_v9  ;;  %v1261_v16 = vadd.f32 %v1133_v13, %v941_v6  ;;  %v1325_v17 = vadd.f32 %v1197_v14, %v1005_v7  ;;  %v949_v14 = vld [vmem:[#allocation8 + $0x160] sm:$0xff] }
 0x145   :  { %v1134_v18 = vadd.f32 %v942_v11, %v733_v15  ;;  %v1198_v19 = vadd.f32 %v1006_v12, %v733_v15  ;;  %1389 = vst [vmem:[#allocation9 + $0x120] sm:$0xff] %v1261_v16  ;;  %v396_v22 = vpop.f32.mrf.mxu0  ;;  %v1013_v15 = vld [vmem:[#allocation8 + $0x360] sm:$0xff] }
 0x146   :  { %1453 = vst [vmem:[#allocation9 + $0x320] sm:$0xff] %v1325_v17  ;;  %v509_v23 = vpop.f32.mrf.mxu1 }
 0x147   :  { %v1262_v20 = vadd.f32 %v1134_v18, %v942_v11  ;;  %v1326_v21 = vadd.f32 %v1198_v19, %v1006_v12  ;;  %v510_v26 = vadd.f32 %v509_v23, %v396_v22  ;;  %v950_v19 = vld [vmem:[#allocation8 + $0x168] sm:$0xff] }
 0x149   :  { %1390 = vst [vmem:[#allocation9 + $0x128] sm:$0xff] %v1262_v20  ;;  %v622_v27 = vpop.f32.mrf.mxu2  ;;  %v1135_v31 = vadd.f32 %v943_v24, %v510_v26  ;;  %v1199_v32 = vadd.f32 %v1007_v25, %v510_v26  ;;  %v1014_v20 = vld [vmem:[#allocation8 + $0x368] sm:$0xff] }
 0x14a   :  { %1454 = vst [vmem:[#allocation9 + $0x328] sm:$0xff] %v1326_v21  ;;  %v735_v28 = vpop.f32.mrf.mxu3 }
 0x14b   :  { %v736_v33 = vadd.f32 %v735_v28, %v622_v27  ;;  %v1263_v34 = vadd.f32 %v1135_v31, %v943_v24  ;;  %v1327_v35 = vadd.f32 %v1199_v32, %v1007_v25  ;;  %v951_v32 = vld [vmem:[#allocation8 + $0x170] sm:$0xff] }
 0x14d   :  { %v1136_v36 = vadd.f32 %v944_v29, %v736_v33  ;;  %v1200_v37 = vadd.f32 %v1008_v30, %v736_v33  ;;  %1391 = vst [vmem:[#allocation9 + $0x130] sm:$0xff] %v1263_v34  ;;  %v399_v40 = vpop.f32.mrf.mxu0  ;;  %v1015_v33 = vld [vmem:[#allocation8 + $0x370] sm:$0xff] }
 0x14e   :  { %1455 = vst [vmem:[#allocation9 + $0x330] sm:$0xff] %v1327_v35  ;;  %v512_v41 = vpop.f32.mrf.mxu1 }
 0x14f   :  { %v1264_v38 = vadd.f32 %v1136_v36, %v944_v29  ;;  %v1328_v39 = vadd.f32 %v1200_v37, %v1008_v30  ;;  %v513_v44 = vadd.f32 %v512_v41, %v399_v40  ;;  %v952_v37 = vld [vmem:[#allocation8 + $0x178] sm:$0xff] }
 0x151   :  { %1392 = vst [vmem:[#allocation9 + $0x138] sm:$0xff] %v1264_v38  ;;  %v625_v45 = vpop.f32.mrf.mxu2  ;;  %v1137_v49 = vadd.f32 %v945_v42, %v513_v44  ;;  %v1201_v50 = vadd.f32 %v1009_v43, %v513_v44  ;;  %v1016_v38 = vld [vmem:[#allocation8 + $0x378] sm:$0xff] }
 0x152   :  { %1456 = vst [vmem:[#allocation9 + $0x338] sm:$0xff] %v1328_v39  ;;  %v738_v46 = vpop.f32.mrf.mxu3 }
 0x153   :  { %v739_v51 = vadd.f32 %v738_v46, %v625_v45  ;;  %v1265_v52 = vadd.f32 %v1137_v49, %v945_v42  ;;  %v1329_v53 = vadd.f32 %v1201_v50, %v1009_v43  ;;  %v953_v50 = vld [vmem:[#allocation8 + $0x180] sm:$0xff] }
 0x155   :  { %v1138_v54 = vadd.f32 %v946_v47, %v739_v51  ;;  %v1202_v55 = vadd.f32 %v1010_v48, %v739_v51  ;;  %1393 = vst [vmem:[#allocation9 + $0x140] sm:$0xff] %v1265_v52  ;;  %v402_v58 = vpop.f32.mrf.mxu0  ;;  %v1017_v51 = vld [vmem:[#allocation8 + $0x380] sm:$0xff] }
 0x156   :  { %1457 = vst [vmem:[#allocation9 + $0x340] sm:$0xff] %v1329_v53  ;;  %v515_v59 = vpop.f32.mrf.mxu1 }
 0x157   :  { %v1266_v56 = vadd.f32 %v1138_v54, %v946_v47  ;;  %v1330_v57 = vadd.f32 %v1202_v55, %v1010_v48  ;;  %v516_v62 = vadd.f32 %v515_v59, %v402_v58  ;;  %v954_v55 = vld [vmem:[#allocation8 + $0x188] sm:$0xff] }
 0x159   :  { %1394 = vst [vmem:[#allocation9 + $0x148] sm:$0xff] %v1266_v56  ;;  %v628_v63 = vpop.f32.mrf.mxu2  ;;  %v1139_v3 = vadd.f32 %v947_v60, %v516_v62  ;;  %v1203_v4 = vadd.f32 %v1011_v61, %v516_v62  ;;  %v1018_v56 = vld [vmem:[#allocation8 + $0x388] sm:$0xff] }
 0x15a   :  { %1458 = vst [vmem:[#allocation9 + $0x348] sm:$0xff] %v1330_v57  ;;  %v741_v0 = vpop.f32.mrf.mxu3 }
 0x15b   :  { %v742_v5 = vadd.f32 %v741_v0, %v628_v63  ;;  %v1267_v6 = vadd.f32 %v1139_v3, %v947_v60  ;;  %v1331_v7 = vadd.f32 %v1203_v4, %v1011_v61  ;;  %v955_v4 = vld [vmem:[#allocation8 + $0x190] sm:$0xff] }
 0x15d   :  { %v1140_v8 = vadd.f32 %v948_v1, %v742_v5  ;;  %v1204_v9 = vadd.f32 %v1012_v2, %v742_v5  ;;  %1395 = vst [vmem:[#allocation9 + $0x150] sm:$0xff] %v1267_v6  ;;  %v405_v12 = vpop.f32.mrf.mxu0  ;;  %v1019_v5 = vld [vmem:[#allocation8 + $0x390] sm:$0xff] }
 0x15e   :  { %1459 = vst [vmem:[#allocation9 + $0x350] sm:$0xff] %v1331_v7  ;;  %v518_v13 = vpop.f32.mrf.mxu1 }
 0x15f   :  { %v1268_v10 = vadd.f32 %v1140_v8, %v948_v1  ;;  %v1332_v11 = vadd.f32 %v1204_v9, %v1012_v2  ;;  %v519_v16 = vadd.f32 %v518_v13, %v405_v12  ;;  %v956_v9 = vld [vmem:[#allocation8 + $0x198] sm:$0xff] }
 0x161   :  { %1396 = vst [vmem:[#allocation9 + $0x158] sm:$0xff] %v1268_v10  ;;  %v631_v17 = vpop.f32.mrf.mxu2  ;;  %v1141_v21 = vadd.f32 %v949_v14, %v519_v16  ;;  %v1205_v22 = vadd.f32 %v1013_v15, %v519_v16  ;;  %v1020_v10 = vld [vmem:[#allocation8 + $0x398] sm:$0xff] }
 0x162   :  { %1460 = vst [vmem:[#allocation9 + $0x358] sm:$0xff] %v1332_v11  ;;  %v744_v18 = vpop.f32.mrf.mxu3 }
 0x163   :  { %v745_v23 = vadd.f32 %v744_v18, %v631_v17  ;;  %v1269_v24 = vadd.f32 %v1141_v21, %v949_v14  ;;  %v1333_v25 = vadd.f32 %v1205_v22, %v1013_v15  ;;  %v957_v22 = vld [vmem:[#allocation8 + $0x1a0] sm:$0xff] }
 0x165   :  { %v1142_v26 = vadd.f32 %v950_v19, %v745_v23  ;;  %v1206_v27 = vadd.f32 %v1014_v20, %v745_v23  ;;  %1397 = vst [vmem:[#allocation9 + $0x160] sm:$0xff] %v1269_v24  ;;  %v408_v30 = vpop.f32.mrf.mxu0  ;;  %v1021_v23 = vld [vmem:[#allocation8 + $0x3a0] sm:$0xff] }
 0x166   :  { %1461 = vst [vmem:[#allocation9 + $0x360] sm:$0xff] %v1333_v25  ;;  %v521_v31 = vpop.f32.mrf.mxu1 }
 0x167   :  { %v1270_v28 = vadd.f32 %v1142_v26, %v950_v19  ;;  %v1334_v29 = vadd.f32 %v1206_v27, %v1014_v20  ;;  %v522_v34 = vadd.f32 %v521_v31, %v408_v30  ;;  %v958_v27 = vld [vmem:[#allocation8 + $0x1a8] sm:$0xff] }
 0x169   :  { %1398 = vst [vmem:[#allocation9 + $0x168] sm:$0xff] %v1270_v28  ;;  %v634_v35 = vpop.f32.mrf.mxu2  ;;  %v1143_v39 = vadd.f32 %v951_v32, %v522_v34  ;;  %v1207_v40 = vadd.f32 %v1015_v33, %v522_v34  ;;  %v1022_v28 = vld [vmem:[#allocation8 + $0x3a8] sm:$0xff] }
 0x16a   :  { %1462 = vst [vmem:[#allocation9 + $0x368] sm:$0xff] %v1334_v29  ;;  %v747_v36 = vpop.f32.mrf.mxu3 }
 0x16b   :  { %v748_v41 = vadd.f32 %v747_v36, %v634_v35  ;;  %v1271_v42 = vadd.f32 %v1143_v39, %v951_v32  ;;  %v1335_v43 = vadd.f32 %v1207_v40, %v1015_v33  ;;  %v959_v40 = vld [vmem:[#allocation8 + $0x1b0] sm:$0xff] }
 0x16d   :  { %v1144_v44 = vadd.f32 %v952_v37, %v748_v41  ;;  %v1208_v45 = vadd.f32 %v1016_v38, %v748_v41  ;;  %1399 = vst [vmem:[#allocation9 + $0x170] sm:$0xff] %v1271_v42  ;;  %v411_v48 = vpop.f32.mrf.mxu0  ;;  %v1023_v41 = vld [vmem:[#allocation8 + $0x3b0] sm:$0xff] }
 0x16e   :  { %1463 = vst [vmem:[#allocation9 + $0x370] sm:$0xff] %v1335_v43  ;;  %v524_v49 = vpop.f32.mrf.mxu1 }
 0x16f   :  { %v1272_v46 = vadd.f32 %v1144_v44, %v952_v37  ;;  %v1336_v47 = vadd.f32 %v1208_v45, %v1016_v38  ;;  %v525_v52 = vadd.f32 %v524_v49, %v411_v48  ;;  %v960_v45 = vld [vmem:[#allocation8 + $0x1b8] sm:$0xff] }
 0x171   :  { %1400 = vst [vmem:[#allocation9 + $0x178] sm:$0xff] %v1272_v46  ;;  %v637_v53 = vpop.f32.mrf.mxu2  ;;  %v1145_v57 = vadd.f32 %v953_v50, %v525_v52  ;;  %v1209_v58 = vadd.f32 %v1017_v51, %v525_v52  ;;  %v1024_v46 = vld [vmem:[#allocation8 + $0x3b8] sm:$0xff] }
 0x172   :  { %1464 = vst [vmem:[#allocation9 + $0x378] sm:$0xff] %v1336_v47  ;;  %v750_v54 = vpop.f32.mrf.mxu3 }
 0x173   :  { %v751_v59 = vadd.f32 %v750_v54, %v637_v53  ;;  %v1273_v60 = vadd.f32 %v1145_v57, %v953_v50  ;;  %v1337_v61 = vadd.f32 %v1209_v58, %v1017_v51  ;;  %v961_v58 = vld [vmem:[#allocation8 + $0x1c0] sm:$0xff] }
 0x175   :  { %v1146_v62 = vadd.f32 %v954_v55, %v751_v59  ;;  %v1210_v63 = vadd.f32 %v1018_v56, %v751_v59  ;;  %1401 = vst [vmem:[#allocation9 + $0x180] sm:$0xff] %v1273_v60  ;;  %v414_v2 = vpop.f32.mrf.mxu0  ;;  %v1025_v59 = vld [vmem:[#allocation8 + $0x3c0] sm:$0xff] }
 0x176   :  { %1465 = vst [vmem:[#allocation9 + $0x380] sm:$0xff] %v1337_v61  ;;  %v527_v3 = vpop.f32.mrf.mxu1 }
 0x177   :  { %v1274_v0 = vadd.f32 %v1146_v62, %v954_v55  ;;  %v1338_v1 = vadd.f32 %v1210_v63, %v1018_v56  ;;  %v528_v6 = vadd.f32 %v527_v3, %v414_v2  ;;  %v962_v63 = vld [vmem:[#allocation8 + $0x1c8] sm:$0xff] }
 0x179   :  { %1402 = vst [vmem:[#allocation9 + $0x188] sm:$0xff] %v1274_v0  ;;  %v640_v7 = vpop.f32.mrf.mxu2  ;;  %v1147_v11 = vadd.f32 %v955_v4, %v528_v6  ;;  %v1211_v12 = vadd.f32 %v1019_v5, %v528_v6  ;;  %v1026_v0 = vld [vmem:[#allocation8 + $0x3c8] sm:$0xff] }
 0x17a   :  { %1466 = vst [vmem:[#allocation9 + $0x388] sm:$0xff] %v1338_v1  ;;  %v753_v8 = vpop.f32.mrf.mxu3 }
 0x17b   :  { %v754_v13 = vadd.f32 %v753_v8, %v640_v7  ;;  %v1275_v14 = vadd.f32 %v1147_v11, %v955_v4  ;;  %v1339_v15 = vadd.f32 %v1211_v12, %v1019_v5  ;;  %v963_v12 = vld [vmem:[#allocation8 + $0x1d0] sm:$0xff] }
 0x17d   :  { %v1148_v16 = vadd.f32 %v956_v9, %v754_v13  ;;  %v1212_v17 = vadd.f32 %v1020_v10, %v754_v13  ;;  %1403 = vst [vmem:[#allocation9 + $0x190] sm:$0xff] %v1275_v14  ;;  %v417_v20 = vpop.f32.mrf.mxu0  ;;  %v1027_v13 = vld [vmem:[#allocation8 + $0x3d0] sm:$0xff] }
 0x17e   :  { %1467 = vst [vmem:[#allocation9 + $0x390] sm:$0xff] %v1339_v15  ;;  %v530_v21 = vpop.f32.mrf.mxu1 }
 0x17f   :  { %v1276_v18 = vadd.f32 %v1148_v16, %v956_v9  ;;  %v1340_v19 = vadd.f32 %v1212_v17, %v1020_v10  ;;  %v531_v24 = vadd.f32 %v530_v21, %v417_v20  ;;  %v964_v17 = vld [vmem:[#allocation8 + $0x1d8] sm:$0xff] }
 0x181   :  { %1404 = vst [vmem:[#allocation9 + $0x198] sm:$0xff] %v1276_v18  ;;  %v643_v25 = vpop.f32.mrf.mxu2  ;;  %v1149_v29 = vadd.f32 %v957_v22, %v531_v24  ;;  %v1213_v30 = vadd.f32 %v1021_v23, %v531_v24  ;;  %v1028_v18 = vld [vmem:[#allocation8 + $0x3d8] sm:$0xff] }
 0x182   :  { %1468 = vst [vmem:[#allocation9 + $0x398] sm:$0xff] %v1340_v19  ;;  %v756_v26 = vpop.f32.mrf.mxu3 }
 0x183   :  { %v757_v31 = vadd.f32 %v756_v26, %v643_v25  ;;  %v1277_v32 = vadd.f32 %v1149_v29, %v957_v22  ;;  %v1341_v33 = vadd.f32 %v1213_v30, %v1021_v23  ;;  %v965_v30 = vld [vmem:[#allocation8 + $0x1e0] sm:$0xff] }
 0x185   :  { %v1150_v34 = vadd.f32 %v958_v27, %v757_v31  ;;  %v1214_v35 = vadd.f32 %v1022_v28, %v757_v31  ;;  %1405 = vst [vmem:[#allocation9 + $0x1a0] sm:$0xff] %v1277_v32  ;;  %v420_v38 = vpop.f32.mrf.mxu0  ;;  %v1029_v31 = vld [vmem:[#allocation8 + $0x3e0] sm:$0xff] }
 0x186   :  { %1469 = vst [vmem:[#allocation9 + $0x3a0] sm:$0xff] %v1341_v33  ;;  %v533_v39 = vpop.f32.mrf.mxu1 }
 0x187   :  { %v1278_v36 = vadd.f32 %v1150_v34, %v958_v27  ;;  %v1342_v37 = vadd.f32 %v1214_v35, %v1022_v28  ;;  %v534_v42 = vadd.f32 %v533_v39, %v420_v38  ;;  %v966_v35 = vld [vmem:[#allocation8 + $0x1e8] sm:$0xff] }
 0x189   :  { %1406 = vst [vmem:[#allocation9 + $0x1a8] sm:$0xff] %v1278_v36  ;;  %v646_v43 = vpop.f32.mrf.mxu2  ;;  %v1151_v47 = vadd.f32 %v959_v40, %v534_v42  ;;  %v1215_v48 = vadd.f32 %v1023_v41, %v534_v42  ;;  %v1030_v36 = vld [vmem:[#allocation8 + $0x3e8] sm:$0xff] }
 0x18a   :  { %1470 = vst [vmem:[#allocation9 + $0x3a8] sm:$0xff] %v1342_v37  ;;  %v759_v44 = vpop.f32.mrf.mxu3 }
 0x18b   :  { %v760_v49 = vadd.f32 %v759_v44, %v646_v43  ;;  %v1279_v50 = vadd.f32 %v1151_v47, %v959_v40  ;;  %v1343_v51 = vadd.f32 %v1215_v48, %v1023_v41  ;;  %v967_v48 = vld [vmem:[#allocation8 + $0x1f0] sm:$0xff] }
 0x18d   :  { %v1152_v52 = vadd.f32 %v960_v45, %v760_v49  ;;  %v1216_v53 = vadd.f32 %v1024_v46, %v760_v49  ;;  %1407 = vst [vmem:[#allocation9 + $0x1b0] sm:$0xff] %v1279_v50  ;;  %v423_v56 = vpop.f32.mrf.mxu0  ;;  %v1031_v49 = vld [vmem:[#allocation8 + $0x3f0] sm:$0xff] }
 0x18e   :  { %1471 = vst [vmem:[#allocation9 + $0x3b0] sm:$0xff] %v1343_v51  ;;  %v536_v57 = vpop.f32.mrf.mxu1 }
 0x18f   :  { %v1280_v54 = vadd.f32 %v1152_v52, %v960_v45  ;;  %v1344_v55 = vadd.f32 %v1216_v53, %v1024_v46  ;;  %v537_v60 = vadd.f32 %v536_v57, %v423_v56  ;;  %v968_v53 = vld [vmem:[#allocation8 + $0x1f8] sm:$0xff] }
 0x191   :  { %1408 = vst [vmem:[#allocation9 + $0x1b8] sm:$0xff] %v1280_v54  ;;  %v649_v61 = vpop.f32.mrf.mxu2  ;;  %v1153_v1 = vadd.f32 %v961_v58, %v537_v60  ;;  %v1217_v2 = vadd.f32 %v1025_v59, %v537_v60  ;;  %v1032_v54 = vld [vmem:[#allocation8 + $0x3f8] sm:$0xff] }
 0x192   :  { %1472 = vst [vmem:[#allocation9 + $0x3b8] sm:$0xff] %v1344_v55  ;;  %v762_v62 = vpop.f32.mrf.mxu3 }
 0x193   :  { %v763_v3 = vadd.f32 %v762_v62, %v649_v61  ;;  %v1281_v4 = vadd.f32 %v1153_v1, %v961_v58  ;;  %v1345_v5 = vadd.f32 %v1217_v2, %v1025_v59 }
 0x195   :  { %v1154_v6 = vadd.f32 %v962_v63, %v763_v3  ;;  %v1218_v7 = vadd.f32 %v1026_v0, %v763_v3  ;;  %1409 = vst [vmem:[#allocation9 + $0x1c0] sm:$0xff] %v1281_v4  ;;  %v426_v10 = vpop.f32.mrf.mxu0 }
 0x196   :  { %1473 = vst [vmem:[#allocation9 + $0x3c0] sm:$0xff] %v1345_v5  ;;  %v539_v11 = vpop.f32.mrf.mxu1 }
 0x197   :  { %v1282_v8 = vadd.f32 %v1154_v6, %v962_v63  ;;  %v1346_v9 = vadd.f32 %v1218_v7, %v1026_v0  ;;  %v540_v14 = vadd.f32 %v539_v11, %v426_v10 }
 0x199   :  { %1410 = vst [vmem:[#allocation9 + $0x1c8] sm:$0xff] %v1282_v8  ;;  %v652_v15 = vpop.f32.mrf.mxu2  ;;  %v1155_v19 = vadd.f32 %v963_v12, %v540_v14  ;;  %v1219_v20 = vadd.f32 %v1027_v13, %v540_v14 }
 0x19a   :  { %1474 = vst [vmem:[#allocation9 + $0x3c8] sm:$0xff] %v1346_v9  ;;  %v765_v16 = vpop.f32.mrf.mxu3 }
 0x19b   :  { %v766_v21 = vadd.f32 %v765_v16, %v652_v15  ;;  %v1283_v22 = vadd.f32 %v1155_v19, %v963_v12  ;;  %v1347_v23 = vadd.f32 %v1219_v20, %v1027_v13 }
 0x19d   :  { %v1156_v24 = vadd.f32 %v964_v17, %v766_v21  ;;  %v1220_v25 = vadd.f32 %v1028_v18, %v766_v21  ;;  %1411 = vst [vmem:[#allocation9 + $0x1d0] sm:$0xff] %v1283_v22  ;;  %v429_v28 = vpop.f32.mrf.mxu0 }
 0x19e   :  { %1475 = vst [vmem:[#allocation9 + $0x3d0] sm:$0xff] %v1347_v23  ;;  %v542_v29 = vpop.f32.mrf.mxu1 }
 0x19f   :  { %v1284_v26 = vadd.f32 %v1156_v24, %v964_v17  ;;  %v1348_v27 = vadd.f32 %v1220_v25, %v1028_v18  ;;  %v543_v32 = vadd.f32 %v542_v29, %v429_v28 }
 0x1a1   :  { %1412 = vst [vmem:[#allocation9 + $0x1d8] sm:$0xff] %v1284_v26  ;;  %v655_v33 = vpop.f32.mrf.mxu2  ;;  %v1157_v37 = vadd.f32 %v965_v30, %v543_v32  ;;  %v1221_v38 = vadd.f32 %v1029_v31, %v543_v32 }
 0x1a2   :  { %1476 = vst [vmem:[#allocation9 + $0x3d8] sm:$0xff] %v1348_v27  ;;  %v768_v34 = vpop.f32.mrf.mxu3 }
 0x1a3   :  { %v769_v39 = vadd.f32 %v768_v34, %v655_v33  ;;  %v1285_v40 = vadd.f32 %v1157_v37, %v965_v30  ;;  %v1349_v41 = vadd.f32 %v1221_v38, %v1029_v31 }
 0x1a5   :  { %v1158_v42 = vadd.f32 %v966_v35, %v769_v39  ;;  %v1222_v43 = vadd.f32 %v1030_v36, %v769_v39  ;;  %1413 = vst [vmem:[#allocation9 + $0x1e0] sm:$0xff] %v1285_v40  ;;  %v432_v46 = vpop.f32.mrf.mxu0 }
 0x1a6   :  { %1477 = vst [vmem:[#allocation9 + $0x3e0] sm:$0xff] %v1349_v41  ;;  %v545_v47 = vpop.f32.mrf.mxu1 }
 0x1a7   :  { %v1286_v44 = vadd.f32 %v1158_v42, %v966_v35  ;;  %v1350_v45 = vadd.f32 %v1222_v43, %v1030_v36  ;;  %v546_v50 = vadd.f32 %v545_v47, %v432_v46 }
 0x1a9   :  { %1414 = vst [vmem:[#allocation9 + $0x1e8] sm:$0xff] %v1286_v44  ;;  %v658_v51 = vpop.f32.mrf.mxu2  ;;  %v1159_v55 = vadd.f32 %v967_v48, %v546_v50  ;;  %v1223_v56 = vadd.f32 %v1031_v49, %v546_v50 }
 0x1aa   :  { %1478 = vst [vmem:[#allocation9 + $0x3e8] sm:$0xff] %v1350_v45  ;;  %v771_v52 = vpop.f32.mrf.mxu3 }
 0x1ab   :  { %v772_v57 = vadd.f32 %v771_v52, %v658_v51  ;;  %v1287_v58 = vadd.f32 %v1159_v55, %v967_v48  ;;  %v1351_v59 = vadd.f32 %v1223_v56, %v1031_v49 }
 0x1ad   :  { %v1160_v60 = vadd.f32 %v968_v53, %v772_v57  ;;  %v1224_v61 = vadd.f32 %v1032_v54, %v772_v57  ;;  %1415 = vst [vmem:[#allocation9 + $0x1f0] sm:$0xff] %v1287_v58 }
 0x1ae   :  { %1479 = vst [vmem:[#allocation9 + $0x3f0] sm:$0xff] %v1351_v59 }
 0x1af   :  { %v1288_v62 = vadd.f32 %v1160_v60, %v968_v53  ;;  %v1352_v63 = vadd.f32 %v1224_v61, %v1032_v54 }
 0x1b1   :  { %1416 = vst [vmem:[#allocation9 + $0x1f8] sm:$0xff] %v1288_v62 }
 0x1b2   :  { %1480 = vst [vmem:[#allocation9 + $0x3f8] sm:$0xff] %v1352_v63 }
 0x1b3   :  { %1493 = dma.vmem_to_hbm [thread:$0]  %s1486_s27, 16384, %s1488_s30, [#allocation5], %s1610_s20, %s1610_s20, %s1611_s21  }
 0x1b4   :  { %1607 = dma.done.wait [#allocation5], 16384  }
 0x1b5   :  { %1608 = vsyncadd [#allocation5], 4294950912 }
 0x1b6   :  { %1498 = vsyncpa [#allocation4], 1 }
 0x1b7   :  { %1499 = vsyncpa [#allocation7], 1 }
 0x1b8   :  { %1500 = vsyncpa [#allocation5], 1 }

</bundles_post_ra>
